<compile_context>
chip_gen: v7x
topology: tpu7x:2x2x1
jax: 0.10.0
libtpu: 0.0.40
codegen_flags: <defaults>
</compile_context>

<pallas_src>
import jax
import jax.numpy as jnp
import numpy as np
from jax.experimental import pallas as pl
from jax.experimental.pallas import tpu as pltpu

COMPUTE_DTYPE = jnp.bfloat16   # MXU-native compute dtype; accumulation stays f32
TOP_HALO = 8                   # interior scratch store lands at an 8-aligned sublane offset
BOT_HALO = 1                   # one halo row below; the logical top halo row is TOP_HALO-1


def make_basic_block_kernel(M, Kmid, has_projection):
    """conv1(3x3,s)+bn1+relu -> conv2(3x3,1)+bn2 -> +shortcut -> relu, fused.

    Per grid step the kernel sees a batched row slab: M = B*OH output rows stacked
    sample-major, each row being one lane-dense (OW*Cout) output row.
    """

    def kernel(*refs):
        if has_projection:
            (x_ref, w1_ref, w2_ref, wsc_ref, b1_ref, b2_ref, bsc_ref,
             mtop_ref, mbot_ref, out_ref, hpad_ref) = refs
        else:
            (x_ref, w1_ref, w2_ref, b1_ref, b2_ref,
             mtop_ref, mbot_ref, out_ref, hpad_ref) = refs

        # ---- conv1 (3x3, stride folded into the slabs) + bn1 + relu --------------
        # Three banded MXU matmuls with M = B*OH rows, K = W*Cin.
        acc1 = jnp.dot(x_ref[0], w1_ref[0], preferred_element_type=jnp.float32)
        acc1 = acc1 + jnp.dot(x_ref[1], w1_ref[1], preferred_element_type=jnp.float32)
        acc1 = acc1 + jnp.dot(x_ref[2], w1_ref[2], preferred_element_type=jnp.float32)
        h = jnp.maximum(acc1 + b1_ref[...], 0.0)
        h_c = h.astype(COMPUTE_DTYPE)        # in-register bf16 copy, reused below

        # ---- stage h with a 1-row logical halo for conv2's ky=0 / ky=2 taps ------
        # Halo rows are re-zeroed every step: with "parallel" megacore sharding a
        # core may never run program 0, so this must not be hoisted.
        zero_row = jnp.zeros((1, Kmid), COMPUTE_DTYPE)
        hpad_ref[pl.ds(TOP_HALO - 1, 1), :] = zero_row
        hpad_ref[pl.ds(TOP_HALO + M, 1), :] = zero_row
        hpad_ref[pl.ds(TOP_HALO, M), :] = h_c

        # ---- conv2 (3x3, stride 1) + bn2 -----------------------------------------
        # ky=1 is fed straight from the in-register value (no store->load dep);
        # ky=0 / ky=2 are shifted scratch reads, with rows that would leak across
        # sample boundaries zeroed by the precomputed 0/1 masks.
        acc2 = jnp.dot(h_c, w2_ref[1], preferred_element_type=jnp.float32)
        t0 = jnp.dot(hpad_ref[pl.ds(TOP_HALO - 1, M), :], w2_ref[0],
                     preferred_element_type=jnp.float32)
        t2 = jnp.dot(hpad_ref[pl.ds(TOP_HALO + 1, M), :], w2_ref[2],
                     preferred_element_type=jnp.float32)
        acc2 = acc2 + mtop_ref[...] * t0 + mbot_ref[...] * t2 + b2_ref[...]

        # ---- shortcut --------------------------------------------------------------
        if has_projection:
            acc2 = acc2 + jnp.dot(x_ref[1], wsc_ref[...],
                                  preferred_element_type=jnp.float32) + bsc_ref[...]
        else:
            # bf16-cast residual; fine at the 5e-2 tolerance used below.
            acc2 = acc2 + x_ref[1].astype(jnp.float32)

        out_ref[...] = jnp.maximum(acc2, 0.0)

    return kernel


def _bn_fold(g, b, m, v, eps=1e-5):
    s = g / jnp.sqrt(v + eps)
    return s, b - m * s


def _band3x3(w, scale, w_in, ow, stride):
    """3x3 conv weight (OIHW) + folded BN scale -> 3 banded (w_in*Ci, ow*Co) matrices.

    band[ky][wi*Ci + ci, ox*Co + co] = scale[co] * w[co, ci, ky, kx]
    whenever wi == ox*stride + kx - 1 is inside [0, w_in)  (W-padding folded in).
    """
    co_n, ci_n = w.shape[0], w.shape[1]
    w_t = jnp.transpose(w * scale[:, None, None, None], (2, 3, 1, 0))  # (ky,kx,ci,co)
    ox = np.arange(ow)
    bands = []
    for ky in range(3):
        a = jnp.zeros((w_in, ci_n, ow, co_n), jnp.float32)
        for kx in range(3):
            wi = ox * stride + kx - 1
            ok = (wi >= 0) & (wi < w_in)
            a = a.at[wi[ok], :, ox[ok], :].set(w_t[ky, kx])
        bands.append(a.reshape(w_in * ci_n, ow * co_n))
    return jnp.stack(bands).astype(COMPUTE_DTYPE)


def _band1x1(w, scale, w_in, ow, stride):
    """1x1 projection conv (OI11) + folded BN scale -> banded (w_in*Ci, ow*Co) matrix."""
    co_n, ci_n = w.shape[0], w.shape[1]
    w_sc = (w.reshape(co_n, ci_n) * scale[:, None]).T          # (ci, co)
    ox = np.arange(ow)
    a = jnp.zeros((w_in, ci_n, ow, co_n), jnp.float32)
    a = a.at[ox * stride, :, ox, :].set(w_sc)
    return a.reshape(w_in * ci_n, ow * co_n).astype(COMPUTE_DTYPE)


def _pick_sample_block(N, OH):
    """Samples per grid step: target M = B*OH ~128-256, keep >=2 grid steps if N > 1."""
    B = max(1, min(N, 256 // max(OH, 1)))
    if N > 1 and pl.cdiv(N, B) < 2:
        B = pl.cdiv(N, 2)      # leave work for the second v7x TensorCore
    return B


def basic_block_forward(x_nchw, params, stride):
    """Wrapper: NCHW in / NCHW out. Layout plumbing + BN/weight folding is plain JAX."""
    N, Cin, H, W = x_nchw.shape
    Cout = params['w1'].shape[0]
    has_projection = (stride != 1) or (Cin != Cout)
    OH = (H + 2 - 3) // stride + 1
    OW = (W + 2 - 3) // stride + 1
    Kin, Kmid = W * Cin, OW * Cout

    B = _pick_sample_block(N, OH)
    G = pl.cdiv(N, B)
    N_pad = G * B
    M = B * OH                      # MXU LHS rows per grid step

    # NCHW -> NHWC, zero-pad batch to G*B samples and H by 1 (W padding is folded
    # into the banded weights), flatten (W, Cin) into one lane-dense axis, cast bf16.
    x_nhwc = jnp.transpose(x_nchw, (0, 2, 3, 1)).astype(jnp.float32)
    if N_pad > N:
        x_nhwc = jnp.pad(x_nhwc, ((0, N_pad - N), (0, 0), (0, 0), (0, 0)))
    xh = jnp.pad(x_nhwc, ((0, 0), (1, 1), (0, 0), (0, 0)))
    xh = xh.reshape(N_pad, H + 2, Kin).astype(COMPUTE_DTYPE)

    # Three per-tap row slabs (conv1 kernel-row ky reads padded rows ky + r*stride),
    # regrouped so each grid step sees one contiguous (3, B*OH, Kin) block whose M
    # axis runs sample-major.  (Building the batched M axis in-kernel would need a
    # cross-sublane reshuffle, so it is done once here as layout plumbing.)
    slabs = [jax.lax.slice(xh, (0, ky, 0),
                           (N_pad, ky + stride * (OH - 1) + 1, Kin),
                           (1, stride, 1)) for ky in range(3)]
    x_in = jnp.stack(slabs, axis=1)                              # (N_pad, 3, OH, Kin)
    x_in = x_in.reshape(G, B, 3, OH, Kin).transpose(0, 2, 1, 3, 4)
    x_in = x_in.reshape(G, 3, M, Kin)

    # Fold eval-mode BN into banded conv weights (scale) + one per-row bias (shift).
    s1, t1 = _bn_fold(params['g1'], params['b1'], params['m1'], params['v1'])
    s2, t2 = _bn_fold(params['g2'], params['b2'], params['m2'], params['v2'])
    w1b = _band3x3(params['w1'], s1, W, OW, stride)              # (3, Kin, Kmid)
    w2b = _band3x3(params['w2'], s2, OW, OW, 1)                  # (3, Kmid, Kmid)
    b1 = jnp.tile(t1, OW).reshape(1, Kmid).astype(jnp.float32)
    b2 = jnp.tile(t2, OW).reshape(1, Kmid).astype(jnp.float32)

    # 0/1 masks zeroing the conv2 ky=0 / ky=2 result rows that would cross sample
    # boundaries inside the batched M axis (host-built: no in-kernel iota/mod).
    rr = np.arange(M) % OH
    mtop = jnp.asarray((rr != 0).astype(np.float32).reshape(M, 1))
    mbot = jnp.asarray((rr != OH - 1).astype(np.float32).reshape(M, 1))

    kernel = make_basic_block_kernel(M, Kmid, has_projection)

    inputs = [x_in, w1b, w2b]
    in_specs = [pl.BlockSpec((None, 3, M, Kin), lambda g: (g, 0, 0, 0)),
                pl.BlockSpec((3, Kin, Kmid), lambda g: (0, 0, 0)),
                pl.BlockSpec((3, Kmid, Kmid), lambda g: (0, 0, 0))]
    if has_projection:
        ssc, tsc = _bn_fold(params['gsc'], params['bsc'], params['msc'], params['vsc'])
        wscb = _band1x1(params['wsc'], ssc, W, OW, stride)       # (Kin, Kmid)
        bsc = jnp.tile(tsc, OW).reshape(1, Kmid).astype(jnp.float32)
        inputs.append(wscb)
        in_specs.append(pl.BlockSpec((Kin, Kmid), lambda g: (0, 0)))
    inputs += [b1, b2]
    in_specs += [pl.BlockSpec((1, Kmid), lambda g: (0, 0)),
                 pl.BlockSpec((1, Kmid), lambda g: (0, 0))]
    if has_projection:
        inputs.append(bsc)
        in_specs.append(pl.BlockSpec((1, Kmid), lambda g: (0, 0)))
    inputs += [mtop, mbot]
    in_specs += [pl.BlockSpec((M, 1), lambda g: (0, 0)),
                 pl.BlockSpec((M, 1), lambda g: (0, 0))]

    out = pl.pallas_call(
        kernel,
        out_shape=jax.ShapeDtypeStruct((G, M, Kmid), jnp.float32),
        grid=(G,),
        in_specs=in_specs,
        out_specs=pl.BlockSpec((None, M, Kmid), lambda g: (g, 0, 0)),
        scratch_shapes=[pltpu.VMEM((TOP_HALO + M + BOT_HALO, Kmid), COMPUTE_DTYPE)],
        compiler_params=pltpu.CompilerParams(dimension_semantics=("parallel",)),
    )(*inputs)

    out = out.reshape(N_pad, OH, OW, Cout)[:N]
    return jnp.transpose(out, (0, 3, 1, 2))                      # back to NCHW


def basic_block_ref(x, params, stride, eps=1e-5):
    """Pure-JAX reference (eval-mode BN), mirrors the PyTorch forward."""
    dn = ('NCHW', 'OIHW', 'NCHW')

    def conv(x, w, s, pad):
        return jax.lax.conv_general_dilated(x, w, (s, s), ((pad, pad), (pad, pad)),
                                            dimension_numbers=dn)

    def bn(x, g, b, m, v):
        g, b, m, v = [a[None, :, None, None] for a in (g, b, m, v)]
        return (x - m) / jnp.sqrt(v + eps) * g + b

    out = jax.nn.relu(bn(conv(x, params['w1'], stride, 1),
                         params['g1'], params['b1'], params['m1'], params['v1']))
    out = bn(conv(out, params['w2'], 1, 1),
             params['g2'], params['b2'], params['m2'], params['v2'])
    Cout, Cin = params['w1'].shape[0], params['w1'].shape[1]
    if stride != 1 or Cin != Cout:
        sc = bn(conv(x, params['wsc'], stride, 0),
                params['gsc'], params['bsc'], params['msc'], params['vsc'])
    else:
        sc = x
    return jax.nn.relu(out + sc)


def _make_params(key, Cin, Cout):
    ks = jax.random.split(key, 15)

    def bn_params(k0, k1, k2, k3):
        return (1.0 + 0.1 * jax.random.normal(k0, (Cout,), jnp.float32),
                0.1 * jax.random.normal(k1, (Cout,), jnp.float32),
                0.1 * jax.random.normal(k2, (Cout,), jnp.float32),
                jax.random.uniform(k3, (Cout,), jnp.float32, 0.5, 1.5))

    g1, b1, m1, v1 = bn_params(ks[2], ks[3], ks[4], ks[5])
    g2, b2, m2, v2 = bn_params(ks[6], ks[7], ks[8], ks[9])
    gsc, bsc, msc, vsc = bn_params(ks[11], ks[12], ks[13], ks[14])
    return {
        'w1': 0.1 * jax.random.normal(ks[0], (Cout, Cin, 3, 3), jnp.float32),
        'w2': 0.1 * jax.random.normal(ks[1], (Cout, Cout, 3, 3), jnp.float32),
        'g1': g1, 'b1': b1, 'm1': m1, 'v1': v1,
        'g2': g2, 'b2': b2, 'm2': m2, 'v2': v2,
        'wsc': 0.1 * jax.random.normal(ks[10], (Cout, Cin, 1, 1), jnp.float32),
        'gsc': gsc, 'bsc': bsc, 'msc': msc, 'vsc': vsc,
    }


if __name__ == "__main__":
    key = jax.random.PRNGKey(0)
    # (N, Cin, Cout, H, W, stride): channel-change projection, strided (downsampling)
    # projection, and identity-shortcut variants.  N is chosen so the batched grid
    # really has several samples per step AND >=2 grid steps; the last config also
    # exercises the non-divisible-batch padding path.
    configs = [(16, 4, 8, 16, 16, 1),
               (16, 8, 16, 16, 16, 2),
               (5, 8, 8, 16, 16, 1)]

    for idx, (N, Cin, Cout, H, W, stride) in enumerate(configs):
        kp, kx, key = jax.random.split(key, 3)
        params = _make_params(kp, Cin, Cout)
        x = jax.random.normal(kx, (N, Cin, H, W), jnp.float32)

        y = jax.block_until_ready(basic_block_forward(x, params, stride))
        y_ref = basic_block_ref(x, params, stride)

        assert y.shape == y_ref.shape, (idx, y.shape, y_ref.shape)
        y_np, yref_np = np.asarray(y), np.asarray(y_ref)
        err = float(np.max(np.abs(y_np - yref_np)))
        # bf16 activations/weights on the MXU -> ~1e-2-level agreement with f32 reference.
        assert np.allclose(y_np, yref_np, rtol=5e-2, atol=5e-2), \
            f"config {idx}: max abs err {err}"

    print("KERNEL_OK")
</pallas_src>

<mosaic_0001>
module attributes {stable_mosaic.version = 11 : i64} {
  func.func @kernel(%arg0: i32, %arg1: memref<1x3x128x64xbf16, #tpu.memory_space<vmem>>, %arg2: memref<3x64x128xbf16, #tpu.memory_space<vmem>>, %arg3: memref<3x128x128xbf16, #tpu.memory_space<vmem>>, %arg4: memref<64x128xbf16, #tpu.memory_space<vmem>>, %arg5: memref<1x128xf32, #tpu.memory_space<vmem>>, %arg6: memref<1x128xf32, #tpu.memory_space<vmem>>, %arg7: memref<1x128xf32, #tpu.memory_space<vmem>>, %arg8: memref<128x1xf32, #tpu.memory_space<vmem>>, %arg9: memref<128x1xf32, #tpu.memory_space<vmem>>, %arg10: memref<1x128x128xf32, #tpu.memory_space<vmem>>, %arg11: memref<137x128xbf16, #tpu.memory_space<vmem>>) attributes {dimension_semantics = [#tpu.dimension_semantics<parallel>], iteration_bounds = array<i64: 2>, scalar_prefetch = 0 : i64, scratch_operands = 1 : i64, tpu.core_type = #tpu.core_type<tc>, window_params = [{transform_indices = @transform_0, window_bounds = array<i64: 1, 3, 128, 64>}, {pipeline_mode = #tpu.pipeline_mode<synchronous>, transform_indices = @transform_1, window_bounds = array<i64: 3, 64, 128>}, {pipeline_mode = #tpu.pipeline_mode<synchronous>, transform_indices = @transform_2, window_bounds = array<i64: 3, 128, 128>}, {pipeline_mode = #tpu.pipeline_mode<synchronous>, transform_indices = @transform_3, window_bounds = array<i64: 64, 128>}, {pipeline_mode = #tpu.pipeline_mode<synchronous>, transform_indices = @transform_4, window_bounds = array<i64: 1, 128>}, {pipeline_mode = #tpu.pipeline_mode<synchronous>, transform_indices = @transform_5, window_bounds = array<i64: 1, 128>}, {pipeline_mode = #tpu.pipeline_mode<synchronous>, transform_indices = @transform_6, window_bounds = array<i64: 1, 128>}, {pipeline_mode = #tpu.pipeline_mode<synchronous>, transform_indices = @transform_7, window_bounds = array<i64: 128, 1>}, {pipeline_mode = #tpu.pipeline_mode<synchronous>, transform_indices = @transform_8, window_bounds = array<i64: 128, 1>}, {transform_indices = @transform_9, window_bounds = array<i64: 1, 128, 128>}]} {
    %c0 = arith.constant 0 : index
    %c0_0 = arith.constant 0 : index
    %c0_1 = arith.constant 0 : index
    %c0_2 = arith.constant 0 : index
    %0 = vector.load %arg1[%c0, %c0_0, %c0_1, %c0_2] : memref<1x3x128x64xbf16, #tpu.memory_space<vmem>>, vector<1x1x128x64xbf16>
    %1 = vector.shape_cast %0 : vector<1x1x128x64xbf16> to vector<128x64xbf16>
    %c0_3 = arith.constant 0 : index
    %c0_4 = arith.constant 0 : index
    %c0_5 = arith.constant 0 : index
    %2 = vector.load %arg2[%c0_3, %c0_4, %c0_5] : memref<3x64x128xbf16, #tpu.memory_space<vmem>>, vector<1x64x128xbf16>
    %3 = vector.shape_cast %2 : vector<1x64x128xbf16> to vector<64x128xbf16>
    %cst = arith.constant dense<0.000000e+00> : vector<128x128xf32>
    %4 = tpu.matmul %1, %3, %cst {dimension_numbers = #tpu.dot_dimension_numbers<[1], [0], [0], [1], [0, 0, 1, 1], [], []>} : vector<128x64xbf16>, vector<64x128xbf16>, vector<128x128xf32> -> vector<128x128xf32>
    %c0_6 = arith.constant 0 : index
    %c1 = arith.constant 1 : index
    %c0_7 = arith.constant 0 : index
    %c0_8 = arith.constant 0 : index
    %5 = vector.load %arg1[%c0_6, %c1, %c0_7, %c0_8] : memref<1x3x128x64xbf16, #tpu.memory_space<vmem>>, vector<1x1x128x64xbf16>
    %6 = vector.shape_cast %5 : vector<1x1x128x64xbf16> to vector<128x64xbf16>
    %c1_9 = arith.constant 1 : index
    %c0_10 = arith.constant 0 : index
    %c0_11 = arith.constant 0 : index
    %7 = vector.load %arg2[%c1_9, %c0_10, %c0_11] : memref<3x64x128xbf16, #tpu.memory_space<vmem>>, vector<1x64x128xbf16>
    %8 = vector.shape_cast %7 : vector<1x64x128xbf16> to vector<64x128xbf16>
    %cst_12 = arith.constant dense<0.000000e+00> : vector<128x128xf32>
    %9 = tpu.matmul %6, %8, %cst_12 {dimension_numbers = #tpu.dot_dimension_numbers<[1], [0], [0], [1], [0, 0, 1, 1], [], []>} : vector<128x64xbf16>, vector<64x128xbf16>, vector<128x128xf32> -> vector<128x128xf32>
    %10 = arith.addf %4, %9 : vector<128x128xf32>
    %c0_13 = arith.constant 0 : index
    %c2 = arith.constant 2 : index
    %c0_14 = arith.constant 0 : index
    %c0_15 = arith.constant 0 : index
    %11 = vector.load %arg1[%c0_13, %c2, %c0_14, %c0_15] : memref<1x3x128x64xbf16, #tpu.memory_space<vmem>>, vector<1x1x128x64xbf16>
    %12 = vector.shape_cast %11 : vector<1x1x128x64xbf16> to vector<128x64xbf16>
    %c2_16 = arith.constant 2 : index
    %c0_17 = arith.constant 0 : index
    %c0_18 = arith.constant 0 : index
    %13 = vector.load %arg2[%c2_16, %c0_17, %c0_18] : memref<3x64x128xbf16, #tpu.memory_space<vmem>>, vector<1x64x128xbf16>
    %14 = vector.shape_cast %13 : vector<1x64x128xbf16> to vector<64x128xbf16>
    %cst_19 = arith.constant dense<0.000000e+00> : vector<128x128xf32>
    %15 = tpu.matmul %12, %14, %cst_19 {dimension_numbers = #tpu.dot_dimension_numbers<[1], [0], [0], [1], [0, 0, 1, 1], [], []>} : vector<128x64xbf16>, vector<64x128xbf16>, vector<128x128xf32> -> vector<128x128xf32>
    %16 = arith.addf %10, %15 : vector<128x128xf32>
    %c0_20 = arith.constant 0 : index
    %c0_21 = arith.constant 0 : index
    %17 = vector.load %arg5[%c0_20, %c0_21] : memref<1x128xf32, #tpu.memory_space<vmem>>, vector<1x128xf32>
    %18 = vector.broadcast %17 : vector<1x128xf32> to vector<128x128xf32>
    %19 = arith.addf %16, %18 : vector<128x128xf32>
    %cst_22 = arith.constant 0.000000e+00 : f32
    %20 = vector.broadcast %cst_22 : f32 to vector<128x128xf32>
    %21 = arith.maximumf %19, %20 : vector<128x128xf32>
    %22 = arith.truncf %21 : vector<128x128xf32> to vector<128x128xbf16>
    %cst_23 = arith.constant 0.000000e+00 : bf16
    %23 = vector.broadcast %cst_23 : bf16 to vector<1x128xbf16>
    %c7 = arith.constant 7 : index
    %c0_24 = arith.constant 0 : index
    %24 = vector.load %arg11[%c7, %c0_24] : memref<137x128xbf16, #tpu.memory_space<vmem>>, vector<1x128xbf16>
    tpu.vector_store %arg11[%c7, %c0_24], %23 {strides = array<i32>} : memref<137x128xbf16, #tpu.memory_space<vmem>>, vector<1x128xbf16>,
    %c136 = arith.constant 136 : index
    %c0_25 = arith.constant 0 : index
    %25 = vector.load %arg11[%c136, %c0_25] : memref<137x128xbf16, #tpu.memory_space<vmem>>, vector<1x128xbf16>
    tpu.vector_store %arg11[%c136, %c0_25], %23 {strides = array<i32>} : memref<137x128xbf16, #tpu.memory_space<vmem>>, vector<1x128xbf16>,
    %c8 = arith.constant 8 : index
    %c0_26 = arith.constant 0 : index
    %26 = vector.load %arg11[%c8, %c0_26] : memref<137x128xbf16, #tpu.memory_space<vmem>>, vector<128x128xbf16>
    tpu.vector_store %arg11[%c8, %c0_26], %22 {strides = array<i32>} : memref<137x128xbf16, #tpu.memory_space<vmem>>, vector<128x128xbf16>,
    %c1_27 = arith.constant 1 : index
    %c0_28 = arith.constant 0 : index
    %c0_29 = arith.constant 0 : index
    %27 = vector.load %arg3[%c1_27, %c0_28, %c0_29] : memref<3x128x128xbf16, #tpu.memory_space<vmem>>, vector<1x128x128xbf16>
    %28 = vector.shape_cast %27 : vector<1x128x128xbf16> to vector<128x128xbf16>
    %cst_30 = arith.constant dense<0.000000e+00> : vector<128x128xf32>
    %29 = tpu.matmul %22, %28, %cst_30 {dimension_numbers = #tpu.dot_dimension_numbers<[1], [0], [0], [1], [0, 0, 1, 1], [], []>} : vector<128x128xbf16>, vector<128x128xbf16>, vector<128x128xf32> -> vector<128x128xf32>
    %c7_31 = arith.constant 7 : index
    %c0_32 = arith.constant 0 : index
    %30 = vector.load %arg11[%c7_31, %c0_32] : memref<137x128xbf16, #tpu.memory_space<vmem>>, vector<128x128xbf16>
    %c0_33 = arith.constant 0 : index
    %c0_34 = arith.constant 0 : index
    %c0_35 = arith.constant 0 : index
    %31 = vector.load %arg3[%c0_33, %c0_34, %c0_35] : memref<3x128x128xbf16, #tpu.memory_space<vmem>>, vector<1x128x128xbf16>
    %32 = vector.shape_cast %31 : vector<1x128x128xbf16> to vector<128x128xbf16>
    %cst_36 = arith.constant dense<0.000000e+00> : vector<128x128xf32>
    %33 = tpu.matmul %30, %32, %cst_36 {dimension_numbers = #tpu.dot_dimension_numbers<[1], [0], [0], [1], [0, 0, 1, 1], [], []>} : vector<128x128xbf16>, vector<128x128xbf16>, vector<128x128xf32> -> vector<128x128xf32>
    %c9 = arith.constant 9 : index
    %c0_37 = arith.constant 0 : index
    %34 = vector.load %arg11[%c9, %c0_37] : memref<137x128xbf16, #tpu.memory_space<vmem>>, vector<128x128xbf16>
    %c2_38 = arith.constant 2 : index
    %c0_39 = arith.constant 0 : index
    %c0_40 = arith.constant 0 : index
    %35 = vector.load %arg3[%c2_38, %c0_39, %c0_40] : memref<3x128x128xbf16, #tpu.memory_space<vmem>>, vector<1x128x128xbf16>
    %36 = vector.shape_cast %35 : vector<1x128x128xbf16> to vector<128x128xbf16>
    %cst_41 = arith.constant dense<0.000000e+00> : vector<128x128xf32>
    %37 = tpu.matmul %34, %36, %cst_41 {dimension_numbers = #tpu.dot_dimension_numbers<[1], [0], [0], [1], [0, 0, 1, 1], [], []>} : vector<128x128xbf16>, vector<128x128xbf16>, vector<128x128xf32> -> vector<128x128xf32>
    %c0_42 = arith.constant 0 : index
    %c0_43 = arith.constant 0 : index
    %38 = vector.load %arg8[%c0_42, %c0_43] : memref<128x1xf32, #tpu.memory_space<vmem>>, vector<128x1xf32>
    %39 = vector.broadcast %38 : vector<128x1xf32> to vector<128x128xf32>
    %40 = arith.mulf %39, %33 : vector<128x128xf32>
    %41 = arith.addf %29, %40 : vector<128x128xf32>
    %c0_44 = arith.constant 0 : index
    %c0_45 = arith.constant 0 : index
    %42 = vector.load %arg9[%c0_44, %c0_45] : memref<128x1xf32, #tpu.memory_space<vmem>>, vector<128x1xf32>
    %43 = vector.broadcast %42 : vector<128x1xf32> to vector<128x128xf32>
    %44 = arith.mulf %43, %37 : vector<128x128xf32>
    %45 = arith.addf %41, %44 : vector<128x128xf32>
    %c0_46 = arith.constant 0 : index
    %c0_47 = arith.constant 0 : index
    %46 = vector.load %arg6[%c0_46, %c0_47] : memref<1x128xf32, #tpu.memory_space<vmem>>, vector<1x128xf32>
    %47 = vector.broadcast %46 : vector<1x128xf32> to vector<128x128xf32>
    %48 = arith.addf %45, %47 : vector<128x128xf32>
    %c0_48 = arith.constant 0 : index
    %c1_49 = arith.constant 1 : index
    %c0_50 = arith.constant 0 : index
    %c0_51 = arith.constant 0 : index
    %49 = vector.load %arg1[%c0_48, %c1_49, %c0_50, %c0_51] : memref<1x3x128x64xbf16, #tpu.memory_space<vmem>>, vector<1x1x128x64xbf16>
    %50 = vector.shape_cast %49 : vector<1x1x128x64xbf16> to vector<128x64xbf16>
    %c0_52 = arith.constant 0 : index
    %c0_53 = arith.constant 0 : index
    %51 = vector.load %arg4[%c0_52, %c0_53] : memref<64x128xbf16, #tpu.memory_space<vmem>>, vector<64x128xbf16>
    %cst_54 = arith.constant dense<0.000000e+00> : vector<128x128xf32>
    %52 = tpu.matmul %50, %51, %cst_54 {dimension_numbers = #tpu.dot_dimension_numbers<[1], [0], [0], [1], [0, 0, 1, 1], [], []>} : vector<128x64xbf16>, vector<64x128xbf16>, vector<128x128xf32> -> vector<128x128xf32>
    %53 = arith.addf %48, %52 : vector<128x128xf32>
    %c0_55 = arith.constant 0 : index
    %c0_56 = arith.constant 0 : index
    %54 = vector.load %arg7[%c0_55, %c0_56] : memref<1x128xf32, #tpu.memory_space<vmem>>, vector<1x128xf32>
    %55 = vector.broadcast %54 : vector<1x128xf32> to vector<128x128xf32>
    %56 = arith.addf %53, %55 : vector<128x128xf32>
    %cst_57 = arith.constant 0.000000e+00 : f32
    %57 = vector.broadcast %cst_57 : f32 to vector<128x128xf32>
    %58 = arith.maximumf %56, %57 : vector<128x128xf32>
    %c0_58 = arith.constant 0 : index
    %c0_59 = arith.constant 0 : index
    %c0_60 = arith.constant 0 : index
    %59 = vector.load %arg10[%c0_58, %c0_59, %c0_60] : memref<1x128x128xf32, #tpu.memory_space<vmem>>, vector<1x128x128xf32>
    %60 = vector.shape_cast %59 : vector<1x128x128xf32> to vector<128x128xf32>
    %61 = vector.shape_cast %58 : vector<128x128xf32> to vector<1x128x128xf32>
    tpu.vector_store %arg10[%c0_58, %c0_59, %c0_60], %61 {strides = array<i32>} : memref<1x128x128xf32, #tpu.memory_space<vmem>>, vector<1x128x128xf32>,
    return
  }
  func.func @transform_0(%arg0: i32) -> (i32, i32, i32, i32) {
    %c0_i32 = arith.constant 0 : i32
    %c0_i32_0 = arith.constant 0 : i32
    %c0_i32_1 = arith.constant 0 : i32
    %c0_i32_2 = arith.constant 0 : i32
    return %arg0, %c0_i32, %c0_i32_0, %c0_i32_1 : i32, i32, i32, i32
  }
  func.func @transform_1(%arg0: i32) -> (i32, i32, i32) {
    %c0_i32 = arith.constant 0 : i32
    %c0_i32_0 = arith.constant 0 : i32
    %c0_i32_1 = arith.constant 0 : i32
    %c0_i32_2 = arith.constant 0 : i32
    return %c0_i32, %c0_i32_0, %c0_i32_1 : i32, i32, i32
  }
  func.func @transform_2(%arg0: i32) -> (i32, i32, i32) {
    %c0_i32 = arith.constant 0 : i32
    %c0_i32_0 = arith.constant 0 : i32
    %c0_i32_1 = arith.constant 0 : i32
    %c0_i32_2 = arith.constant 0 : i32
    return %c0_i32, %c0_i32_0, %c0_i32_1 : i32, i32, i32
  }
  func.func @transform_3(%arg0: i32) -> (i32, i32) {
    %c0_i32 = arith.constant 0 : i32
    %c0_i32_0 = arith.constant 0 : i32
    %c0_i32_1 = arith.constant 0 : i32
    return %c0_i32, %c0_i32_0 : i32, i32
  }
  func.func @transform_4(%arg0: i32) -> (i32, i32) {
    %c0_i32 = arith.constant 0 : i32
    %c0_i32_0 = arith.constant 0 : i32
    %c0_i32_1 = arith.constant 0 : i32
    return %c0_i32, %c0_i32_0 : i32, i32
  }
  func.func @transform_5(%arg0: i32) -> (i32, i32) {
    %c0_i32 = arith.constant 0 : i32
    %c0_i32_0 = arith.constant 0 : i32
    %c0_i32_1 = arith.constant 0 : i32
    return %c0_i32, %c0_i32_0 : i32, i32
  }
  func.func @transform_6(%arg0: i32) -> (i32, i32) {
    %c0_i32 = arith.constant 0 : i32
    %c0_i32_0 = arith.constant 0 : i32
    %c0_i32_1 = arith.constant 0 : i32
    return %c0_i32, %c0_i32_0 : i32, i32
  }
  func.func @transform_7(%arg0: i32) -> (i32, i32) {
    %c0_i32 = arith.constant 0 : i32
    %c0_i32_0 = arith.constant 0 : i32
    %c0_i32_1 = arith.constant 0 : i32
    return %c0_i32, %c0_i32_0 : i32, i32
  }
  func.func @transform_8(%arg0: i32) -> (i32, i32) {
    %c0_i32 = arith.constant 0 : i32
    %c0_i32_0 = arith.constant 0 : i32
    %c0_i32_1 = arith.constant 0 : i32
    return %c0_i32, %c0_i32_0 : i32, i32
  }
  func.func @transform_9(%arg0: i32) -> (i32, i32, i32) {
    %c0_i32 = arith.constant 0 : i32
    %c0_i32_0 = arith.constant 0 : i32
    %c0_i32_1 = arith.constant 0 : i32
    return %arg0, %c0_i32, %c0_i32_0 : i32, i32, i32
  }
}

</mosaic_0001>

<bundles_post_ra>
// kernel: tpu_custom_call.1
= control target key start
LH: loop header
LB: loop body
LE: loop exit
PB: predicated region body
PF: predicated region fallthrough
CT: control target
= control target key end

     0   :  { %14 = vsyncpa [#allocation4], 0  ;;  %s4157_s0 = inlined_call_operand.vmem [shape: bf16[2,3,128,64], index: 0, kind: input, shape index: {}]   ;;  %s4158_s1 = inlined_call_operand.vmem [shape: bf16[3,64,128], index: 1, kind: input, shape index: {}]   ;;  %s4159_s2 = inlined_call_operand.vmem [shape: bf16[3,128,128], index: 2, kind: input, shape index: {}]   ;;  %s4160_s3 = inlined_call_operand.vmem [shape: bf16[64,128], index: 3, kind: input, shape index: {}]   ;;  %s4161_s4 = inlined_call_operand.vmem [shape: f32[1,128], index: 4, kind: input, shape index: {}]   ;;  %s4162_s5 = inlined_call_operand.vmem [shape: f32[1,128], index: 5, kind: input, shape index: {}]   ;;  %s4163_s6 = inlined_call_operand.vmem [shape: f32[1,128], index: 6, kind: input, shape index: {}]   ;;  %s4164_s7 = inlined_call_operand.vmem [shape: f32[128,1], index: 7, kind: input, shape index: {}]   ;;  %s4165_s8 = inlined_call_operand.vmem [shape: f32[128,1], index: 8, kind: input, shape index: {}]   ;;  %s4166_s9 = inlined_call_operand.hbm [shape: f32[2,128,128], index: 9, kind: output, shape index: {}]  }
   0x1   :  { %16 = vsyncpa [#allocation4 + $0x1], 0  ;;  %s3453_s30 = smov 0   ;;  %s3455_s10 = smov 0  }
   0x2   :  { %s3457_s11 = smov 0   ;;  %s3459_s12 = smov 0  }
   0x3 LB: > { %s3474_s13 = sadd.s32 4294967295, %s3397_s12   ;;  %s2501_s14 = sadd.s32 4294967294, %s3397_s12   ;;  %s3397_s12 = sphi %s3459_s12, %s4220_s12   ;;  %s3393_s11 = sphi %s3457_s11, %s4219_s11   ;;  %s3389_s10 = sphi %s3455_s10, %s4218_s10   ;;  %s3385_s30 = sphi %s3453_s30, %s4217_s30  }
   0x4   : > { %s3478_s15 = sadd.s32 1, %s3397_s12   ;;  %s223_s16 = sadd.s32 1, %s3393_s11 }
   0x5   : > { %s220_s17 = ssub.s32 %s3397_s12, %s3478_s15  ;;  %p233_p0 = scmp.ne.s32.totalorder %s3393_s11, %s3389_s10 }
   0x6   : > { %p221_p1 = scmp.eq.s32.totalorder %s220_s17, 0  ;;  %p234_p2 = scmp.eq.s32.totalorder %s3474_s13, 1 }
   0x7   : > { %p239_p3 = scmp.ne.s32.totalorder %s3389_s10, %s3385_s30  ;;  %p240_p4 = scmp.eq.s32.totalorder %s2501_s14, 1 }
   0x8   : > { %s3489_s18 = scalar_select %p221_p1, %s3393_s11, %s223_s16  }
   0x9   : > { %p3491_p5 = por %p234_p2, %p233_p0  ;;  %p3495_p6 = por %p240_p4, %p239_p3 }
   0xa   : > { %p2504_p7 = scmp.ge.s32.totalorder %s3397_s12, 1  ;;  %p290_p8 = scmp.lt.s32.totalorder %s3397_s12, 3 }
   0xc   : > { %p291_p9 = pnand %p2504_p7, %p290_p8 }
   0xe   : > { %294 = sbr.rel (%p291_p9) target bundleno = 681 (0x2a9), region = 56 }
  0x15   : > { %v3245_v0 = vld [vmem:[%s4158_s1 + $0x20] sm:$0xff]   ;;  %p326_p10 = scmp.lt.s32.totalorder %s3474_s13, 1  ;;  %v3246_v1 = vld [vmem:[%s4158_s1 + $0x28] sm:$0xff]   ;;  %v3247_v2 = vld [vmem:[%s4158_s1 + $0x30] sm:$0xff]   ;;  %vm446_vm0 = vcmask 523264   ;;  %vm1027_vm1 = vcmask 1043459  }
  0x16   : > { %2904 = vmatprep.subr.bf16.mxu0 %v3245_v0  ;;  %v3248_v4 = vld [vmem:[%s4158_s1 + $0x38] sm:$0xff]   ;;  %v3251_v5 = vld [vmem:[%s4158_s1] sm:$0xff]   ;;  %v3254_v8 = vld [vmem:[%s4158_s1 + $0x8] sm:$0xff]   ;;  %vm1028_vm2 = vsmask.f32 7950  ;;  %vm1033_vm4 = vcmask 1040384  }
  0x17   : > { %s327_s25 = scalar_select %p326_p10, %s3474_s13, 1  ;;  %2905 = vmatpush3.bf16.msra.mxu0 %v3245_v0  ;;  %v3257_v9 = vld [vmem:[%s4158_s1 + $0x10] sm:$0xff]   ;;  %v3260_v12 = vld [vmem:[%s4158_s1 + $0x18] sm:$0xff]   ;;  %v3263_v13 = vld [vmem:[%s4158_s1 + $0x40] sm:$0xff]   ;;  %vm1034_vm5 = vsmask.f32 256 }
  0x18   : > { %2906 = vmatprep.subr.bf16.mxu0 %v3246_v1  ;;  %v3266_v20 = vld [vmem:[%s4158_s1 + $0x48] sm:$0xff]   ;;  %v3269_v21 = vld [vmem:[%s4158_s1 + $0x50] sm:$0xff]   ;;  %v3272_v24 = vld [vmem:[%s4158_s1 + $0x58] sm:$0xff]   ;;  %v3399_v51 = vmov 0   ;;  %vm1204_vm7 = vsmask.f32 4352 }
  0x19   : > { %s3200_s28 = smul.u32 192, %s327_s25  ;;  %v3281_v36 = vld [vmem:[%s4159_s2] sm:$0xff]   ;;  %v3282_v37 = vld [vmem:[%s4159_s2 + $0x8] sm:$0xff]   ;;  %v3283_v38 = vld [vmem:[%s4159_s2 + $0x10] sm:$0xff]   ;;  %3244 = vset.pattern.permute.xlu1 %v3399_v51  ;;  %3243 = vset.pattern.permute.xlu0 %v3399_v51  ;;  %vm1515_vm8 = vsmask.f32 7424 }
  0x1a   : > { %2976 = vmatprep.subr.bf16.mxu1 %v3281_v36  ;;  %vm1029_vm3 = vmand %vm1027_vm1, %vm1028_vm2  ;;  %v1030_v39 = vld [vmem:[#allocation2] sm:$0x8]  ;;  %v3284_v41 = vld [vmem:[%s4159_s2 + $0x18] sm:$0xff]   ;;  %s2765_s23 = sshll.u32 %s3474_s13, 11  ;;  %s3400_s29 = smov [#allocation3]  }
  0x1b   : > { %s3515_s16 = scalar_lea.vmem %s4157_s0, %s3200_s28  ;;  %2907 = vmatpush3.bf16.msra.mxu0 %v3246_v1  ;;  %2977 = vmatpush3.bf16.msra.mxu1 %v3281_v36  ;;  %v1031_v40 = vsel %vm1029_vm3, 0, %v1030_v39  ;;  %v3285_v42 = vld [vmem:[%s4159_s2 + $0x20] sm:$0xff]   ;;  %v3286_v43 = vld [vmem:[%s4159_s2 + $0x28] sm:$0xff]   ;;  %v3287_v44 = vld [vmem:[%s4159_s2 + $0x30] sm:$0xff]   ;;  %s4107_s27 = scalar_lea.hbm %s4166_s9, %s2765_s23 }
  0x1c   : > { %v3249_v3 = vld [vmem:[%s3515_s16 + $0x40] sm:$0xff]   ;;  %2908 = vmatprep.subr.bf16.mxu0 %v3247_v2  ;;  %v3250_v6 = vld [vmem:[%s3515_s16 + $0x48] sm:$0xff]   ;;  %v3252_v7 = vld [vmem:[%s3515_s16 + $0x50] sm:$0xff]   ;;  %2978 = vmatprep.subr.bf16.mxu1 %v3282_v37  ;;  %1032 = vst [vmem:[#allocation2] sm:$0x8] %v1031_v40  ;;  %s3339_s14 = sshll.u32 %s3400_s29, 4  ;;  %s3340_s14 = int_to_ptr.vmem [resolvable:$false] %s3339_s14 }
  0x1d   : > { %2912 = vmatprep.mubr.msk.bf16.mxu0 %vm446_vm0, %v3249_v3  ;;  %v3253_v10 = vld [vmem:[%s3515_s16 + $0x58] sm:$0xff]   ;;  %v3255_v11 = vld [vmem:[%s3515_s16 + $0x60] sm:$0xff]   ;;  %v3256_v14 = vld [vmem:[%s3515_s16 + $0x68] sm:$0xff]   ;;  %s3341_s17 = scalar_lea.vmem %s3340_s14, 4096 }
  0x1e   : > { %v3258_v15 = vld [vmem:[%s3515_s16 + $0x70] sm:$0xff]   ;;  %v3259_v16 = vld [vmem:[%s3515_s16 + $0x78] sm:$0xff]   ;;  %v3261_v17 = vld [vmem:[%s3515_s16] sm:$0xff]  }
  0x1f   : > { %2909 = vmatpush3.bf16.msra.mxu0 %v3247_v2  ;;  %v3262_v18 = vld [vmem:[%s3515_s16 + $0x8] sm:$0xff]   ;;  %v3264_v19 = vld [vmem:[%s3515_s16 + $0x10] sm:$0xff]   ;;  %v3265_v22 = vld [vmem:[%s3515_s16 + $0x18] sm:$0xff]   ;;  %2979 = vmatpush3.bf16.msra.mxu1 %v3282_v37 }
  0x20   : > { %2910 = vmatprep.subr.bf16.mxu0 %v3248_v4  ;;  %v3267_v23 = vld [vmem:[%s3515_s16 + $0x20] sm:$0xff]   ;;  %v3268_v25 = vld [vmem:[%s3515_s16 + $0x28] sm:$0xff]   ;;  %v3270_v26 = vld [vmem:[%s3515_s16 + $0x30] sm:$0xff]   ;;  %2980 = vmatprep.subr.bf16.mxu1 %v3283_v38 }
  0x21   : > { %v3271_v27 = vld [vmem:[%s3515_s16 + $0x38] sm:$0xff]   ;;  %v3273_v28 = vld [vmem:[%s3515_s16 + $0x80] sm:$0xff]   ;;  %v3274_v29 = vld [vmem:[%s3515_s16 + $0x88] sm:$0xff]  }
  0x22   : > { %v3275_v30 = vld [vmem:[%s3515_s16 + $0x90] sm:$0xff]   ;;  %v3276_v31 = vld [vmem:[%s3515_s16 + $0x98] sm:$0xff]   ;;  %v3277_v32 = vld [vmem:[%s3515_s16 + $0xa0] sm:$0xff]  }
  0x23   : > { %2911 = vmatpush3.bf16.msra.mxu0 %v3248_v4  ;;  %v3278_v33 = vld [vmem:[%s3515_s16 + $0xa8] sm:$0xff]   ;;  %v3279_v34 = vld [vmem:[%s3515_s16 + $0xb0] sm:$0xff]   ;;  %v3280_v35 = vld [vmem:[%s3515_s16 + $0xb8] sm:$0xff]   ;;  %2981 = vmatpush3.bf16.msra.mxu1 %v3283_v38 }
  0x24   : > { %2928 = vmatprep.subr.bf16.mxu0 %v3251_v5  ;;  %2982 = vmatprep.subr.bf16.mxu1 %v3284_v41  ;;  %v3290_v45 = vld [vmem:[%s4159_s2 + $0x38] sm:$0xff]   ;;  %v3619_v46 = vld [vmem:[%s4159_s2 + $0x80] sm:$0xff]   ;;  %vm1035_vm6 = vmand %vm1033_vm4, %vm1034_vm5 }
  0x25   : > { %v1036_v47 = vld [vmem:[#allocation2 + $0x44] sm:$0x1]  ;;  %v3632_v50 = vld [vmem:[%s4160_s3 + $0x8] sm:$0xff]   ;;  %v1739_v52 = vld [vmem:[%s4164_s7 + $0x10] sm:$0xff] }
  0x26   : > { %2913 = vmatmul.mubr.msk.bf16.vlgmr.msra.gmra.mrb[0].mxu0 %vm446_vm0, %v3250_v6  ;;  %v1037_v48 = vsel %vm1035_vm6, 0, %v1036_v47  ;;  %v3625_v49 = vld [vmem:[%s4160_s3] sm:$0xff]   ;;  %v3645_v54 = vld [vmem:[%s4160_s3 + $0x10] sm:$0xff]   ;;  %1765 = vperm.xlu1 %3244, %v1739_v52   ;;  %v1740_v55 = vld [vmem:[%s4164_s7 + $0x18] sm:$0xff] }
  0x27   : > { %2929 = vmatpush3.bf16.msra.mxu0 %v3251_v5  ;;  %2916 = vmatprep.mubr.msk.bf16.mxu0 %vm446_vm0, %v3252_v7  ;;  %1038 = vst [vmem:[#allocation2 + $0x44] sm:$0x1] %v1037_v48  ;;  %v1737_v53 = vld [vmem:[%s4164_s7] sm:$0xff]  ;;  %v1738_v56 = vld [vmem:[%s4164_s7 + $0x8] sm:$0xff]  ;;  %v3658_v57 = vld [vmem:[%s4160_s3 + $0x18] sm:$0xff]  }
  0x28   : > { %2930 = vmatprep.subr.bf16.mxu0 %v3254_v8  ;;  %2983 = vmatpush3.bf16.msra.mxu1 %v3284_v41  ;;  %v3327_v58 = vld [vmem:[%s3515_s16 + $0x40] sm:$0xff]   ;;  %v1742_v59 = vld [vmem:[%s4164_s7 + $0x28] sm:$0xff]  ;;  %v1744_v62 = vld [vmem:[%s4164_s7 + $0x38] sm:$0xff] }
  0x29   : > { %2984 = vmatprep.subr.bf16.mxu1 %v3285_v42  ;;  %1755 = vperm.xlu0 %3243, %v1737_v53   ;;  %v1741_v60 = vld [vmem:[%s4164_s7 + $0x20] sm:$0xff]  ;;  %v3328_v61 = vld [vmem:[%s3515_s16 + $0x48] sm:$0xff]   ;;  %v1743_v63 = vld [vmem:[%s4164_s7 + $0x30] sm:$0xff] }
  0x2a   : > { %1770 = vperm.xlu1 %3244, %v1740_v55   ;;  %v3329_v0 = vld [vmem:[%s3515_s16 + $0x50] sm:$0xff]   ;;  %v1746_v1 = vld [vmem:[%s4164_s7 + $0x48] sm:$0xff]  ;;  %v1745_v2 = vld [vmem:[%s4164_s7 + $0x40] sm:$0xff] }
  0x2b   : > { %2931 = vmatpush3.bf16.msra.mxu0 %v3254_v8  ;;  %v3330_v3 = vld [vmem:[%s3515_s16 + $0x58] sm:$0xff]   ;;  %v1747_v5 = vld [vmem:[%s4164_s7 + $0x50] sm:$0xff]  ;;  %v3331_v6 = vld [vmem:[%s3515_s16 + $0x60] sm:$0xff]  }
  0x2c   : > { %2932 = vmatprep.subr.bf16.mxu0 %v3257_v9  ;;  %2985 = vmatpush3.bf16.msra.mxu1 %v3285_v42  ;;  %v1748_v4 = vld [vmem:[%s4164_s7 + $0x58] sm:$0xff]  ;;  %v1750_v7 = vld [vmem:[%s4164_s7 + $0x68] sm:$0xff]  ;;  %v1749_v8 = vld [vmem:[%s4164_s7 + $0x60] sm:$0xff] }
  0x2d   : > { %2986 = vmatprep.subr.bf16.mxu1 %v3286_v43  ;;  %1760 = vperm.xlu0 %3243, %v1738_v56   ;;  %v2005_v56 = vld [vmem:[%s4165_s8 + $0x58] sm:$0xff] }
  0x2e   : > { %2917 = vmatmul.mubr.msk.bf16.gmra.mrb[4].mxu0 %vm446_vm0, %v3253_v10  ;;  %1780 = vperm.xlu1 %3244, %v1742_v59   ;;  %v1752_v10 = vld [vmem:[%s4164_s7 + $0x78] sm:$0xff] }
  0x2f   : > { %2920 = vmatprep.mubr.msk.bf16.mxu0 %vm446_vm0, %v3255_v11  ;;  %2933 = vmatpush3.bf16.msra.mxu0 %v3257_v9  ;;  %v3332_v9 = vld [vmem:[%s3515_s16 + $0x68] sm:$0xff]   ;;  %v1751_v11 = vld [vmem:[%s4164_s7 + $0x70] sm:$0xff] }
  0x30   : > { %2934 = vmatprep.subr.bf16.mxu0 %v3260_v12  ;;  %2987 = vmatpush3.bf16.msra.mxu1 %v3286_v43 }
  0x31   : > { %2988 = vmatprep.subr.bf16.mxu1 %v3287_v44  ;;  %1775 = vperm.xlu0 %3243, %v1741_v60  }
  0x32   : > { %1790 = vperm.xlu1 %3244, %v1744_v62  }
  0x33   : > { %2935 = vmatpush3.bf16.msra.mxu0 %v3260_v12  ;;  %v1995_v12 = vld [vmem:[%s4165_s8 + $0x8] sm:$0xff] }
  0x34   : > { %2952 = vmatprep.subr.bf16.mxu0 %v3263_v13  ;;  %2989 = vmatpush3.bf16.msra.mxu1 %v3287_v44  ;;  %v2003_v44 = vld [vmem:[%s4165_s8 + $0x48] sm:$0xff] }
  0x35   : > { %2990 = vmatprep.subr.bf16.mxu1 %v3290_v45  ;;  %1785 = vperm.xlu0 %3243, %v1743_v63  }
  0x36   : > { %2921 = vmatmul.mubr.msk.bf16.gmra.mrb[8].mxu0 %vm446_vm0, %v3256_v14  ;;  %1800 = vperm.xlu1 %3244, %v1746_v1   ;;  %v3719_v14 = vld [vmem:[%s4161_s4] ss:$0 sm:$0xff] }
  0x37   : > { %2924 = vmatprep.mubr.msk.bf16.mxu0 %vm446_vm0, %v3258_v15  ;;  %v1997_v15 = vld [vmem:[%s4165_s8 + $0x18] sm:$0xff] }
  0x38   : > { %2991 = vmatpush3.bf16.msra.mxu1 %v3290_v45  ;;  %v2002_v45 = vld [vmem:[%s4165_s8 + $0x40] sm:$0xff] }
  0x39   : > { %3008 = vmatprep.subr.bf16.mxu1 %v3619_v46  ;;  %1795 = vperm.xlu0 %3243, %v1745_v2  }
  0x3a   : > { %1810 = vperm.xlu1 %3244, %v1748_v4  }
  0x3d   : > { %1805 = vperm.xlu0 %3243, %v1747_v5  }
  0x3e   : > { %2925 = vmatmul.mubr.msk.bf16.gmra.mrb[12].mxu0 %vm446_vm0, %v3259_v16  ;;  %1820 = vperm.xlu1 %3244, %v1750_v7   ;;  %v1996_v16 = vld [vmem:[%s4165_s8 + $0x10] sm:$0xff]  ;;  %v2007_v7 = vld [vmem:[%s4165_s8 + $0x68] sm:$0xff] }
  0x3f   : > { %2936 = vmatprep.mubr.msk.bf16.mxu0 %vm446_vm0, %v3261_v17 }
  0x41   : > { %1815 = vperm.xlu0 %3243, %v1749_v8  }
  0x42   : > { %1830 = vperm.xlu1 %3244, %v1752_v10  }
  0x45   : > { %1825 = vperm.xlu0 %3243, %v1751_v11  }
  0x46   : > { %2937 = vmatmul.mubr.msk.bf16.vlgmr.msra.gmra.mrb[0].mxu0 %vm446_vm0, %v3262_v18  ;;  %2017 = vperm.xlu1 %3244, %v1995_v12   ;;  %v2006_v12 = vld [vmem:[%s4165_s8 + $0x60] sm:$0xff] }
  0x47   : > { %2953 = vmatpush3.bf16.msra.mxu0 %v3263_v13  ;;  %2940 = vmatprep.mubr.msk.bf16.mxu0 %vm446_vm0, %v3264_v19  ;;  %v1994_v13 = vld [vmem:[%s4165_s8] sm:$0xff] }
  0x48   : > { %2954 = vmatprep.subr.bf16.mxu0 %v3266_v20 }
  0x49   : > { %2012 = vperm.xlu0 %3243, %v1994_v13  }
  0x4a   : > { %2027 = vperm.xlu1 %3244, %v1997_v15  }
  0x4b   : > { %2955 = vmatpush3.bf16.msra.mxu0 %v3266_v20 }
  0x4c   : > { %2956 = vmatprep.subr.bf16.mxu0 %v3269_v21 }
  0x4d   : > { %2022 = vperm.xlu0 %3243, %v1996_v16  }
  0x4e   : > { %2941 = vmatmul.mubr.msk.bf16.gmra.mrb[4].mxu0 %vm446_vm0, %v3265_v22 }
  0x4f   : > { %2944 = vmatprep.mubr.msk.bf16.mxu0 %vm446_vm0, %v3267_v23  ;;  %2957 = vmatpush3.bf16.msra.mxu0 %v3269_v21 }
  0x50   : > { %2958 = vmatprep.subr.bf16.mxu0 %v3272_v24 }
  0x53   : > { %2959 = vmatpush3.bf16.msra.mxu0 %v3272_v24 }
  0x54   : > { %3072 = vmatprep.subr.bf16.mxu0 %v3625_v49 }
  0x56   : > { %2945 = vmatmul.mubr.msk.bf16.gmra.mrb[8].mxu0 %vm446_vm0, %v3268_v25 }
  0x57   : > { %2948 = vmatprep.mubr.msk.bf16.mxu0 %vm446_vm0, %v3270_v26  ;;  %v1999_v26 = vld [vmem:[%s4165_s8 + $0x28] sm:$0xff] }
  0x58   : > { %2037 = vperm.xlu1 %3244, %v1999_v26  }
  0x5e   : > { %2949 = vmatmul.mubr.msk.bf16.gmra.mrb[12].mxu0 %vm446_vm0, %v3271_v27  ;;  %v1998_v27 = vld [vmem:[%s4165_s8 + $0x20] sm:$0xff] }
  0x5f   : > { %2960 = vmatprep.mubr.msk.bf16.mxu0 %vm446_vm0, %v3273_v28  ;;  %2032 = vperm.xlu0 %3243, %v1998_v27  }
  0x66   : > { %2961 = vmatmul.mubr.msk.bf16.vlgmr.msra.gmra.mrb[0].mxu0 %vm446_vm0, %v3274_v29 }
  0x67   : > { %2964 = vmatprep.mubr.msk.bf16.mxu0 %vm446_vm0, %v3275_v30  ;;  %3073 = vmatpush3.bf16.msra.mxu0 %v3625_v49 }
  0x68   : > { %3074 = vmatprep.subr.bf16.mxu0 %v3632_v50 }
  0x6b   : > { %3075 = vmatpush3.bf16.msra.mxu0 %v3632_v50 }
  0x6c   : > { %3076 = vmatprep.subr.bf16.mxu0 %v3645_v54 }
  0x6e   : > { %2965 = vmatmul.mubr.msk.bf16.gmra.mrb[4].mxu0 %vm446_vm0, %v3276_v31 }
  0x6f   : > { %2968 = vmatprep.mubr.msk.bf16.mxu0 %vm446_vm0, %v3277_v32  ;;  %3077 = vmatpush3.bf16.msra.mxu0 %v3645_v54 }
  0x70   : > { %3078 = vmatprep.subr.bf16.mxu0 %v3658_v57 }
  0x73   : > { %3079 = vmatpush3.bf16.msra.mxu0 %v3658_v57 }
  0x76   : > { %2969 = vmatmul.mubr.msk.bf16.gmra.mrb[8].mxu0 %vm446_vm0, %v3278_v33  ;;  %v2001_v33 = vld [vmem:[%s4165_s8 + $0x38] sm:$0xff] }
  0x77   : > { %2972 = vmatprep.mubr.msk.bf16.mxu0 %vm446_vm0, %v3279_v34  ;;  %v2000_v34 = vld [vmem:[%s4165_s8 + $0x30] sm:$0xff]  ;;  %2047 = vperm.xlu1 %3244, %v2001_v33  }
  0x78   : > { %2042 = vperm.xlu0 %3243, %v2000_v34   ;;  %v2008_v33 = vld [vmem:[%s4165_s8 + $0x70] sm:$0xff] }
  0x7b   : > { %2057 = vperm.xlu1 %3244, %v2003_v44  }
  0x7c   : > { %2052 = vperm.xlu0 %3243, %v2002_v45  }
  0x7e   : > { %2973 = vmatmul.mubr.msk.bf16.gmra.mrb[12].mxu0 %vm446_vm0, %v3280_v35 }
  0x7f   : > { %3080 = vmatprep.mubr.msk.bf16.mxu0 %vm446_vm0, %v3327_v58  ;;  %v2004_v58 = vld [vmem:[%s4165_s8 + $0x50] sm:$0xff]  ;;  %2067 = vperm.xlu1 %3244, %v2005_v56  }
  0x80   : > { %2062 = vperm.xlu0 %3243, %v2004_v58  }
  0x83   : > { %2077 = vperm.xlu1 %3244, %v2007_v7  }
  0x84   : > { %2072 = vperm.xlu0 %3243, %v2006_v12  }
  0x86   : > { %3081 = vmatmul.mubr.msk.bf16.vlgmr.msra.gmra.mrb[16].mxu0 %vm446_vm0, %v3328_v61 }
  0x87   : > { %3084 = vmatprep.mubr.msk.bf16.mxu0 %vm446_vm0, %v3329_v0 }
  0x88   : > { %2082 = vperm.xlu0 %3243, %v2008_v33  }
  0x8e   : > { %3085 = vmatmul.mubr.msk.bf16.gmra.mrb[20].mxu0 %vm446_vm0, %v3330_v3 }
  0x8f   : > { %3088 = vmatprep.mubr.msk.bf16.mxu0 %vm446_vm0, %v3331_v6 }
  0x96   : > { %3089 = vmatmul.mubr.msk.bf16.gmra.mrb[24].mxu0 %vm446_vm0, %v3332_v9 }
 0x139   : > { %v2962_v17 = vpop.f32.mrb[0].mxu0 }
 0x13a   : > { %v989_v18 = vadd.f32 %v2962_v17, %v3719_v14  ;;  %v901_v19 = vpop.f32.mrb[1].mxu0 }
 0x13b   : > { %v987_v20 = vadd.f32 %v3719_v14, %v901_v19  ;;  %v2963_v21 = vpop.f32.mrb[2].mxu0 }
 0x13c   : > { %v990_v22 = vadd.f32 %v2963_v21, %v3719_v14  ;;  %v904_v23 = vpop.f32.mrb[3].mxu0  ;;  %v1005_v28 = vmax.f32 %v989_v18, 0.0 }
 0x13d   : > { %v1003_v24 = vmax.f32 %v987_v20, 0.0  ;;  %v988_v25 = vadd.f32 %v3719_v14, %v904_v23 }
 0x13e   : > { %v1006_v29 = vmax.f32 %v990_v22, 0.0 }
 0x13f   : > { %v2749_v30 = vpack.c.bf16 %v1003_v24, %v1003_v24  ;;  %v1004_v31 = vmax.f32 %v988_v25, 0.0 }
 0x140   : > { %v3737_v32 = vpack.c.bf16 %v1006_v29, %v1005_v28 }
 0x141   : > { %1095 = vst [vmem:[#allocation2 + $0x4] sm:$0xf] %v2749_v30  ;;  %v3745_v35 = vpack.c.bf16 %v1004_v31, %v1003_v24  ;;  %v2769_v36 = vpack.c.bf16 %v1005_v28, %v1004_v31  ;;  %v2966_v37 = vpop.f32.mrb[4].mxu0  ;;  %v2009_v24 = vld [vmem:[%s4165_s8 + $0x78] sm:$0xff] }
 0x142   : > { %v993_v38 = vadd.f32 %v2966_v37, %v3719_v14  ;;  %v917_v39 = vpop.f32.mrb[5].mxu0  ;;  %2087 = vperm.xlu1 %3244, %v2009_v24   ;;  %v3300_v24 = vld [vmem:[%s4159_s2 + $0xa0] sm:$0xff]  }
 0x143   : > { %2801 = vst [vmem:[#allocation2 + $0x8] sm:$0xff] %v2769_v36   ;;  %v991_v40 = vadd.f32 %v3719_v14, %v917_v39  ;;  %v2967_v41 = vpop.f32.mrb[6].mxu0 }
 0x144   : > { %v994_v42 = vadd.f32 %v2967_v41, %v3719_v14  ;;  %v920_v43 = vpop.f32.mrb[7].mxu0  ;;  %v1009_v51 = vmax.f32 %v993_v38, 0.0 }
 0x145   : > { %v1007_v47 = vmax.f32 %v991_v40, 0.0  ;;  %v992_v48 = vadd.f32 %v3719_v14, %v920_v43 }
 0x146   : > { %v1010_v52 = vmax.f32 %v994_v42, 0.0 }
 0x147   : > { %v2774_v53 = vpack.c.bf16 %v1007_v47, %v1006_v29  ;;  %v1008_v55 = vmax.f32 %v992_v48, 0.0 }
 0x148   : > { %v3763_v59 = vpack.c.bf16 %v1010_v52, %v1009_v51  ;;  %v3288_v60 = vld [vmem:[#allocation2] sm:$0xf8]  }
 0x149   : > { %2802 = vst [vmem:[#allocation2 + $0x10] sm:$0xff] %v2774_v53   ;;  %v3765_v61 = vpack.c.bf16 %v1008_v55, %v1007_v47  ;;  %v2779_v62 = vpack.c.bf16 %v1009_v51, %v1008_v55  ;;  %v2970_v63 = vpop.f32.mrb[8].mxu0  ;;  %v1206_v5 = vshrl.u32 %v3288_v60, 16  ;;  %v1209_v6 = vshll.u32 %v3288_v60, 16 }
 0x14a   : > { %v997_v0 = vadd.f32 %v2970_v63, %v3719_v14  ;;  %v933_v1 = vpop.f32.mrb[9].mxu0  ;;  %v3289_v2 = vld [vmem:[#allocation2 + $0x8] sm:$0xff]  }
 0x14b   : > { %2803 = vst [vmem:[#allocation2 + $0x18] sm:$0xff] %v2779_v62   ;;  %v995_v3 = vadd.f32 %v3719_v14, %v933_v1  ;;  %v2971_v4 = vpop.f32.mrb[10].mxu0  ;;  %v1214_v10 = vshrl.u32 %v3289_v2, 16  ;;  %v1217_v11 = vshll.u32 %v3289_v2, 16  ;;  %v1208_v16 = vrot.slane %v1206_v5, 3  ;;  %v3294_v1 = vld [vmem:[%s4159_s2 + $0x88] sm:$0xff]  }
 0x14c   : > { %v998_v8 = vadd.f32 %v2971_v4, %v3719_v14  ;;  %v936_v9 = vpop.f32.mrb[11].mxu0  ;;  %v1211_v17 = vrot.slane %v1209_v6, 4  ;;  %v1013_v18 = vmax.f32 %v997_v0, 0.0  ;;  %v3305_v33 = vld [vmem:[#allocation2 + $0x4] sm:$0xff]  }
 0x14d   : > { %v1011_v13 = vmax.f32 %v995_v3, 0.0  ;;  %v996_v15 = vadd.f32 %v3719_v14, %v936_v9  ;;  %v1216_v20 = vrot.slane %v1214_v10, 3  ;;  %v1219_v21 = vrot.slane %v1217_v11, 4  ;;  %v3296_v11 = vld [vmem:[%s4159_s2 + $0x90] sm:$0xff]  }
 0x14e   : > { %v1014_v19 = vmax.f32 %v998_v8, 0.0  ;;  %v1212_v26 = vor.u32 %v1211_v17, %v1208_v16 }
 0x14f   : > { %v2784_v22 = vpack.c.bf16 %v1011_v13, %v1010_v52  ;;  %v1012_v23 = vmax.f32 %v996_v15, 0.0  ;;  %v1220_v27 = vor.u32 %v1219_v21, %v1216_v20  ;;  %v3298_v20 = vld [vmem:[%s4159_s2 + $0x98] sm:$0xff]  }
 0x150   : > { %v3780_v25 = vpack.c.bf16 %v1014_v19, %v1013_v18  ;;  %v3291_v28 = vld [vmem:[#allocation2 + $0x10] sm:$0xff]  }
 0x151   : > { %2804 = vst [vmem:[#allocation2 + $0x20] sm:$0xff] %v2784_v22   ;;  %v3782_v29 = vpack.c.bf16 %v1012_v23, %v1011_v13  ;;  %v2789_v30 = vpack.c.bf16 %v1013_v18, %v1012_v23  ;;  %v2974_v31 = vpop.f32.mrb[12].mxu0  ;;  %v1221_v37 = vsel %vm1204_vm7, %v1212_v26, %v1220_v27  ;;  %v1223_v38 = vshrl.u32 %v3291_v28, 16 }
 0x152   : > { %v1001_v34 = vadd.f32 %v2974_v31, %v3719_v14  ;;  %v949_v36 = vpop.f32.mrb[13].mxu0  ;;  %v1226_v39 = vshll.u32 %v3291_v28, 16  ;;  %v3293_v40 = vld [vmem:[#allocation2 + $0x18] sm:$0xff]   ;;  %2992 = vmatprep.mubr.bf16.mxu1 %v1221_v37 }
 0x153   : > { %2805 = vst [vmem:[#allocation2 + $0x28] sm:$0xff] %v2789_v30   ;;  %v999_v41 = vadd.f32 %v3719_v14, %v949_v36  ;;  %v2975_v42 = vpop.f32.mrb[14].mxu0  ;;  %v1225_v45 = vrot.slane %v1223_v38, 3  ;;  %v1232_v52 = vshrl.u32 %v3293_v40, 16  ;;  %v1235_v53 = vshll.u32 %v3293_v40, 16 }
 0x154   : > { %v1002_v43 = vadd.f32 %v2975_v42, %v3719_v14  ;;  %v952_v44 = vpop.f32.mrb[15].mxu0  ;;  %v1228_v47 = vrot.slane %v1226_v39, 4  ;;  %v1017_v55 = vmax.f32 %v1001_v34, 0.0 }
 0x155   : > { %v1015_v48 = vmax.f32 %v999_v41, 0.0  ;;  %v1000_v51 = vadd.f32 %v3719_v14, %v952_v44  ;;  %v1234_v63 = vrot.slane %v1232_v52, 3  ;;  %v1237_v0 = vrot.slane %v1235_v53, 4  ;;  %v3306_v41 = vld [vmem:[#allocation2 + $0xc] sm:$0xff]  }
 0x156   : > { %v1018_v56 = vmax.f32 %v1002_v43, 0.0  ;;  %v1229_v58 = vor.u32 %v1228_v47, %v1225_v45  ;;  %v3302_v45 = vld [vmem:[%s4159_s2 + $0xa8] sm:$0xff]   ;;  %v1519_v47 = vshll.u32 %v3305_v33, 16 }
 0x157   : > { %v2794_v60 = vpack.c.bf16 %v1015_v48, %v1014_v19  ;;  %v1016_v62 = vmax.f32 %v1000_v51, 0.0  ;;  %v1238_v7 = vor.u32 %v1237_v0, %v1234_v63  ;;  %v1517_v0 = vshrl.u32 %v3305_v33, 16 }
 0x158   : > { %v3795_v2 = vpack.c.bf16 %v1018_v56, %v1017_v55  ;;  %v2764_v3 = vpack.c.bf16 %v1018_v56, %v1018_v56  ;;  %v1230_v4 = vsel %vm1204_vm7, %v1220_v27, %v1229_v58  ;;  %v3295_v5 = vld [vmem:[#allocation2 + $0x20] sm:$0xff]  }
 0x159   : > { %2806 = vst [vmem:[#allocation2 + $0x30] sm:$0xff] %v2794_v60   ;;  %v3798_v14 = vpack.c.bf16 %v1016_v62, %v1015_v48  ;;  %v2799_v6 = vpack.c.bf16 %v1017_v55, %v1016_v62  ;;  %2993 = vmatmul.mubr.bf16.vlgmr.msra.gmra.mrb[0].mxu1 %v1230_v4  ;;  %v1241_v8 = vshrl.u32 %v3295_v5, 16  ;;  %v1244_v9 = vshll.u32 %v3295_v5, 16  ;;  %v3308_v62 = vld [vmem:[#allocation2 + $0x14] sm:$0xff]  }
 0x15a   : > { %1110 = vst [vmem:[#allocation2 + $0x40] sm:$0xf] %v2764_v3  ;;  %3009 = vmatpush3.bf16.msra.mxu1 %v3619_v46  ;;  %v1239_v10 = vsel %vm1204_vm7, %v1229_v58, %v1238_v7  ;;  %v3297_v12 = vld [vmem:[#allocation2 + $0x28] sm:$0xff]   ;;  %v1524_v55 = vshll.u32 %v3306_v41, 16  ;;  %v3304_v58 = vld [vmem:[%s4159_s2 + $0xb0] sm:$0xff]   ;;  %v1521_v60 = vrot.slane %v1519_v47, 1 }
 0x15b   : > { %2807 = vst [vmem:[#allocation2 + $0x38] sm:$0xff] %v2799_v6   ;;  %3010 = vmatprep.subr.bf16.mxu1 %v3294_v1  ;;  %2996 = vmatprep.mubr.bf16.mxu1 %v1239_v10  ;;  %v1243_v13 = vrot.slane %v1241_v8, 3  ;;  %v1246_v15 = vrot.slane %v1244_v9, 4  ;;  %v1250_v16 = vshrl.u32 %v3297_v12, 16  ;;  %v1253_v17 = vshll.u32 %v3297_v12, 16  ;;  %v3310_v3 = vld [vmem:[#allocation2 + $0x1c] sm:$0xff]  }
 0x15c   : > { %v1522_v4 = vor.u32 %v1521_v60, %v1517_v0  ;;  %v3307_v5 = vld [vmem:[%s4159_s2 + $0xb8] sm:$0xff]   ;;  %v1532_v6 = vshll.u32 %v3308_v62, 16  ;;  %v1540_v9 = vshll.u32 %v3310_v3, 16  ;;  %v1528_v10 = vshrl.u32 %v3306_v41, 16  ;;  %v3309_v12 = vld [vmem:[%s4159_s2 + $0x40] sm:$0xff]  }
 0x15d   : > { %v1247_v18 = vor.u32 %v1246_v15, %v1243_v13  ;;  %v1252_v46 = vrot.slane %v1250_v16, 3  ;;  %v1255_v19 = vrot.slane %v1253_v17, 4  ;;  %v3312_v13 = vld [vmem:[#allocation2 + $0x24] sm:$0xff]   ;;  %v1536_v16 = vshrl.u32 %v3308_v62, 16  ;;  %v3322_v62 = vld [vmem:[%s4159_s2 + $0x70] sm:$0xff]  }
 0x15e   : > { %3011 = vmatpush3.bf16.msra.mxu1 %v3294_v1  ;;  %v1526_v1 = vrot.slane %v1524_v55, 1  ;;  %v1542_v17 = vrot.slane %v1540_v9, 1 }
 0x15f   : > { %3012 = vmatprep.subr.bf16.mxu1 %v3296_v11  ;;  %v1248_v21 = vsel %vm1204_vm7, %v1238_v7, %v1247_v18  ;;  %v1256_v23 = vor.u32 %v1255_v19, %v1252_v46  ;;  %v3311_v19 = vld [vmem:[%s4159_s2 + $0x48] sm:$0xff]  }
 0x160   : > { %v3299_v22 = vld [vmem:[#allocation2 + $0x30] sm:$0xff]   ;;  %v1527_v8 = vsel %vm1515_vm8, %v1522_v4, %v1526_v1  ;;  %v1530_v15 = vor.u32 %v1528_v10, %v1526_v1  ;;  %v3324_v1 = vld [vmem:[%s4159_s2 + $0x78] sm:$0xff]   ;;  %v3897_v4 = vpop.permute.xlu0 %1755 }
 0x161   : > { %2997 = vmatmul.mubr.bf16.gmra.mrb[4].mxu1 %v1248_v21  ;;  %v3303_v26 = vld [vmem:[#allocation2 + $0x40] ss:$0 sps:$4 sm:$0xff]   ;;  %v1259_v27 = vshrl.u32 %v3299_v22, 16  ;;  %v1262_v28 = vshll.u32 %v3299_v22, 16  ;;  %v1257_v30 = vsel %vm1204_vm7, %v1247_v18, %v1256_v23  ;;  %v3314_v18 = vld [vmem:[#allocation2 + $0x2c] sm:$0xff]  }
 0x162   : > { %3013 = vmatpush3.bf16.msra.mxu1 %v3296_v11  ;;  %v3301_v31 = vld [vmem:[#allocation2 + $0x38] sm:$0xff]   ;;  %3000 = vmatprep.mubr.bf16.mxu1 %v1257_v30  ;;  %v1277_v37 = vshrl.u32 %v3303_v26, 16  ;;  %v1280_v38 = vshll.u32 %v3303_v26, 16  ;;  %v1534_v11 = vrot.slane %v1532_v6, 1  ;;  %v1544_v26 = vshrl.u32 %v3310_v3, 16 }
 0x163   : > { %3014 = vmatprep.subr.bf16.mxu1 %v3298_v20  ;;  %v1261_v34 = vrot.slane %v1259_v27, 3  ;;  %v1264_v36 = vrot.slane %v1262_v28, 4  ;;  %v1268_v39 = vshrl.u32 %v3301_v31, 16  ;;  %v1271_v40 = vshll.u32 %v3301_v31, 16  ;;  %v3313_v28 = vld [vmem:[%s4159_s2 + $0x50] sm:$0xff]  }
 0x164   : > { %v1279_v51 = vrot.slane %v1277_v37, 3  ;;  %v1282_v52 = vrot.slane %v1280_v38, 4  ;;  %v1538_v46 = vor.u32 %v1536_v16, %v1534_v11  ;;  %v1535_v21 = vsel %vm1515_vm8, %v1530_v15, %v1534_v11  ;;  %v3315_v37 = vld [vmem:[%s4159_s2 + $0x58] sm:$0xff]  }
 0x165   : > { %v1265_v42 = vor.u32 %v1264_v36, %v1261_v34  ;;  %v1270_v43 = vrot.slane %v1268_v39, 3  ;;  %v1273_v44 = vrot.slane %v1271_v40, 4  ;;  %v1546_v30 = vor.u32 %v1544_v26, %v1542_v17  ;;  %v3318_v38 = vld [vmem:[#allocation2 + $0x3c] sm:$0xff]  }
 0x166   : > { %3015 = vmatpush3.bf16.msra.mxu1 %v3298_v20  ;;  %v1283_v63 = vor.u32 %v1282_v52, %v1279_v51  ;;  %v1548_v20 = vshll.u32 %v3312_v13, 16  ;;  %v1543_v22 = vsel %vm1515_vm8, %v1538_v46, %v1542_v17  ;;  %v1552_v31 = vshrl.u32 %v3312_v13, 16 }
 0x167   : > { %3016 = vmatprep.subr.bf16.mxu1 %v3300_v24  ;;  %v1266_v48 = vsel %vm1204_vm7, %v1256_v23, %v1265_v42  ;;  %v1274_v53 = vor.u32 %v1273_v44, %v1270_v43  ;;  %v1556_v23 = vshll.u32 %v3314_v18, 16  ;;  %v3317_v43 = vld [vmem:[%s4159_s2 + $0x60] sm:$0xff]   ;;  %v1576_v60 = vshrl.u32 %v3318_v38, 16 }
 0x168   : > { %v1550_v27 = vrot.slane %v1548_v20, 1 }
 0x169   : > { %3001 = vmatmul.mubr.bf16.gmra.mrb[8].mxu1 %v1266_v48  ;;  %v1275_v56 = vsel %vm1204_vm7, %v1265_v42, %v1274_v53  ;;  %v1284_v7 = vsel %vm1204_vm7, %v1274_v53, %v1283_v63  ;;  %v1558_v33 = vrot.slane %v1556_v23, 1  ;;  %v1560_v42 = vshrl.u32 %v3314_v18, 16  ;;  %v3321_v48 = vld [vmem:[#allocation2 + $0x44] ss:$0 sps:$4 sm:$0x11]   ;;  %v3319_v53 = vld [vmem:[%s4159_s2 + $0x68] sm:$0xff]  }
 0x16a   : > { %3017 = vmatpush3.bf16.msra.mxu1 %v3300_v24  ;;  %3004 = vmatprep.mubr.bf16.mxu1 %v1275_v56  ;;  %v3316_v24 = vld [vmem:[#allocation2 + $0x34] sm:$0xff]   ;;  %v1554_v36 = vor.u32 %v1552_v31, %v1550_v27  ;;  %v1551_v39 = vsel %vm1515_vm8, %v1546_v30, %v1550_v27  ;;  %v1580_v56 = vshll.u32 %v3321_v48, 16 }
 0x16b   : > { %3018 = vmatprep.subr.bf16.mxu1 %v3302_v45  ;;  %v1564_v34 = vshll.u32 %v3316_v24, 16  ;;  %v1568_v44 = vshrl.u32 %v3316_v24, 16  ;;  %v1562_v47 = vor.u32 %v1560_v42, %v1558_v33 }
 0x16c   : > { %v1559_v40 = vsel %vm1515_vm8, %v1554_v36, %v1558_v33  ;;  %v1582_v0 = vrot.slane %v1580_v56, 1 }
 0x16d   : > { %v1566_v41 = vrot.slane %v1564_v34, 1 }
 0x16e   : > { %3019 = vmatpush3.bf16.msra.mxu1 %v3302_v45  ;;  %v1572_v45 = vshll.u32 %v3318_v38, 16 }
 0x16f   : > { %3020 = vmatprep.subr.bf16.mxu1 %v3304_v58  ;;  %v1570_v51 = vor.u32 %v1568_v44, %v1566_v41  ;;  %v1567_v55 = vsel %vm1515_vm8, %v1562_v47, %v1566_v41 }
 0x170   : > { %v1574_v52 = vrot.slane %v1572_v45, 1 }
 0x171   : > { %3005 = vmatmul.mubr.bf16.gmra.mrb[12].mxu1 %v1284_v7  ;;  %v3903_v7 = vpop.permute.xlu1 %1765 }
 0x172   : > { %3021 = vmatpush3.bf16.msra.mxu1 %v3304_v58  ;;  %3024 = vmatprep.mubr.bf16.mxu1 %v1527_v8  ;;  %v1575_v58 = vsel %vm1515_vm8, %v1570_v51, %v1574_v52  ;;  %v1578_v63 = vor.u32 %v1576_v60, %v1574_v52  ;;  %v3905_v8 = vpop.permute.xlu0 %1760 }
 0x173   : > { %3022 = vmatprep.subr.bf16.mxu1 %v3307_v5 }
 0x174   : > { %v1583_v3 = vsel %vm1515_vm8, %v1578_v63, %v1582_v0 }
 0x175   : > { %v3907_v9 = vpop.permute.xlu1 %1770 }
 0x176   : > { %3023 = vmatpush3.bf16.msra.mxu1 %v3307_v5  ;;  %v3909_v10 = vpop.permute.xlu0 %1775 }
 0x177   : > { %3040 = vmatprep.subr.bf16.mxu1 %v3309_v12 }
 0x179   : > { %3025 = vmatmul.mubr.bf16.vlgmr.msra.gmra.mrb[16].mxu1 %v1535_v21  ;;  %v3911_v11 = vpop.permute.xlu1 %1780 }
 0x17a   : > { %3028 = vmatprep.mubr.bf16.mxu1 %v1543_v22  ;;  %3041 = vmatpush3.bf16.msra.mxu1 %v3309_v12  ;;  %v3913_v12 = vpop.permute.xlu0 %1785 }
 0x17b   : > { %3042 = vmatprep.subr.bf16.mxu1 %v3311_v19 }
 0x17d   : > { %v3915_v13 = vpop.permute.xlu1 %1790 }
 0x17e   : > { %3043 = vmatpush3.bf16.msra.mxu1 %v3311_v19  ;;  %v3917_v15 = vpop.permute.xlu0 %1795 }
 0x17f   : > { %3044 = vmatprep.subr.bf16.mxu1 %v3313_v28  ;;  %4177 = vst [vmem:[#allocation14_spill] sm:$0xff] %v3917_v15 }
 0x181   : > { %3029 = vmatmul.mubr.bf16.gmra.mrb[20].mxu1 %v1551_v39  ;;  %v3919_v16 = vpop.permute.xlu1 %1800 }
 0x182   : > { %3032 = vmatprep.mubr.bf16.mxu1 %v1559_v40  ;;  %3045 = vmatpush3.bf16.msra.mxu1 %v3313_v28  ;;  %4178 = vst [vmem:[#allocation15_spill] sm:$0xff] %v3919_v16  ;;  %v3921_v17 = vpop.permute.xlu0 %1805 }
 0x183   : > { %3046 = vmatprep.subr.bf16.mxu1 %v3315_v37  ;;  %4179 = vst [vmem:[#allocation16_spill] sm:$0xff] %v3921_v17 }
 0x185   : > { %v3923_v18 = vpop.permute.xlu1 %1810 }
 0x186   : > { %3047 = vmatpush3.bf16.msra.mxu1 %v3315_v37  ;;  %4180 = vst [vmem:[#allocation17_spill] sm:$0xff] %v3923_v18  ;;  %v1816_v20 = vpop.permute.xlu0 %1815 }
 0x187   : > { %3048 = vmatprep.subr.bf16.mxu1 %v3317_v43 }
 0x189   : > { %3033 = vmatmul.mubr.bf16.gmra.mrb[24].mxu1 %v1567_v55  ;;  %v1821_v23 = vpop.permute.xlu1 %1820 }
 0x18a   : > { %3036 = vmatprep.mubr.bf16.mxu1 %v1575_v58  ;;  %3049 = vmatpush3.bf16.msra.mxu1 %v3317_v43  ;;  %v1826_v24 = vpop.permute.xlu0 %1825 }
 0x18b   : > { %3050 = vmatprep.subr.bf16.mxu1 %v3319_v53 }
 0x18d   : > { %v1831_v28 = vpop.permute.xlu1 %1830 }
 0x18e   : > { %3051 = vmatpush3.bf16.msra.mxu1 %v3319_v53  ;;  %v2013_v33 = vpop.permute.xlu0 %2012 }
 0x18f   : > { %3052 = vmatprep.subr.bf16.mxu1 %v3322_v62 }
 0x191   : > { %3037 = vmatmul.mubr.bf16.gmra.mrb[28].mxu1 %v1583_v3  ;;  %v3941_v34 = vpop.permute.xlu1 %2017 }
 0x192   : > { %3053 = vmatpush3.bf16.msra.mxu1 %v3322_v62  ;;  %3056 = vmatprep.mubr.bf16.mxu1 %v3745_v35  ;;  %v2023_v40 = vpop.permute.xlu0 %2022 }
 0x193   : > { %3054 = vmatprep.subr.bf16.mxu1 %v3324_v1 }
 0x195   : > { %v2028_v41 = vpop.permute.xlu1 %2027 }
 0x196   : > { %3055 = vmatpush3.bf16.msra.mxu1 %v3324_v1  ;;  %v3951_v44 = vpop.permute.xlu0 %2032 }
 0x197   : > { %3096 = vmatprep.subr.bf16.mxu1 %v3625_v49 }
 0x199   : > { %3057 = vmatmul.mubr.bf16.vlgmr.msra.gmra.mrb[32].mxu1 %v3737_v32  ;;  %v3877_v32 = vpop.f32.mrb[16].mxu0  ;;  %v3953_v48 = vpop.permute.xlu1 %2037 }
 0x19a   : > { %3060 = vmatprep.mubr.bf16.mxu1 %v3765_v61  ;;  %3100 = vmatpush3.bf16.msra.mxu1 %v3625_v49  ;;  %v3333_v49 = vld [vmem:[%s3515_s16 + $0x70] sm:$0xff]   ;;  %v3879_v35 = vpop.f32.mrb[17].mxu0  ;;  %v3955_v51 = vpop.permute.xlu0 %2042 }
 0x19b   : > { %3097 = vmatprep.subr.bf16.mxu1 %v3632_v50 }
 0x19d   : > { %v3957_v55 = vpop.permute.xlu1 %2047 }
 0x19e   : > { %3101 = vmatpush3.bf16.msra.mxu1 %v3632_v50  ;;  %v3334_v50 = vld [vmem:[%s3515_s16 + $0x78] sm:$0xff]   ;;  %v3959_v60 = vpop.permute.xlu0 %2052  ;;  %s323_s16 = sand.u32 1, %s3389_s10  }
 0x19f   : > { %3098 = vmatprep.subr.bf16.mxu1 %v3645_v54  ;;  %4185 = vst [vmem:[#allocation22_spill] sm:$0xff] %v3959_v60  ;;  %s2505_s21 = sshll.u32 %s323_s16, 7  ;;  %s4116_s13 = scalar_lea.sflag [#allocation4], %s323_s16 }
 0x1a0   : > { %s4037_s22 = scalar_lea.vmem [#allocation3], %s2505_s21 }
 0x1a1   : > { %3061 = vmatmul.mubr.bf16.gmra.mrb[36].mxu1 %v3763_v59  ;;  %v3961_v62 = vpop.permute.xlu1 %2057  ;;  %s2439_s24 = sshll.u32 %s4037_s22, 4  ;;  %s4109_s24 = int_to_ptr.vmem [resolvable:$true] %s2439_s24 }
 0x1a2   : > { %3064 = vmatprep.mubr.bf16.mxu1 %v3782_v29  ;;  %3102 = vmatpush3.bf16.msra.mxu1 %v3645_v54  ;;  %v3881_v54 = vpop.f32.mrb[18].mxu0  ;;  %4186 = vst [vmem:[#allocation23_spill] sm:$0xff] %v3961_v62  ;;  %s3335_s28 = scalar_lea.vmem %s4109_s24, 2048  ;;  %p3342_p0 = scmp.lt.s32.totalorder %s4109_s24, %s3340_s14 }
 0x1a3   : > { %3099 = vmatprep.subr.bf16.mxu1 %v3658_v57  ;;  %v3883_v59 = vpop.f32.mrb[19].mxu0  ;;  %p3336_p11 = scmp.ne.s32.totalorder %s4109_s24, %s3335_s28  ;;  %p3343_p1 = scmp.lt.s32.totalorder %s3341_s17, %s3335_s28 }
 0x1a5   : > { %p3337_p12 = pnand %p3336_p11, %p3491_p5  ;;  %p3344_p2 = por %p3343_p1, %p3342_p0 }
 0x1a6   : > { %3103 = vmatpush3.bf16.msra.mxu1 %v3658_v57  ;;  %v3885_v57 = vpop.f32.mrb[20].mxu0 }
 0x1a7   : > { %4169 = vst [vmem:[#allocation6_spill] sm:$0xff] %v3885_v57  ;;  %v3887_v61 = vpop.f32.mrb[21].mxu0  ;;  %p3338_p13 = pneg %p3337_p12 }
 0x1a8   : > { %4170 = vst [vmem:[#allocation7_spill] sm:$0xff] %v3887_v61 }
 0x1a9   : > { %3065 = vmatmul.mubr.bf16.gmra.mrb[40].mxu1 %v3780_v25  ;;  %v3889_v25 = vpop.f32.mrb[22].mxu0  ;;  %p3345_p3 = pnand %p3344_p2, %p3338_p13 }
 0x1aa   : > { %3068 = vmatprep.mubr.bf16.mxu1 %v3798_v14  ;;  %4171 = vst [vmem:[#allocation8_spill] sm:$0xff] %v3889_v25  ;;  %v3891_v29 = vpop.f32.mrb[23].mxu0 }
 0x1ab   : > { %4172 = vst [vmem:[#allocation9_spill] sm:$0xff] %v3891_v29 }
 0x1b1   : > { %3069 = vmatmul.mubr.bf16.gmra.mrb[44].mxu1 %v3795_v2  ;;  %v3893_v2 = vpop.f32.mrb[24].mxu0 }
 0x1b2   : > { %3092 = vmatprep.mubr.msk.bf16.mxu1 %vm446_vm0, %v3333_v49  ;;  %4173 = vst [vmem:[#allocation10_spill] sm:$0xff] %v3893_v2  ;;  %v3895_v14 = vpop.f32.mrb[25].mxu0  ;;  %v3967_v49 = vpop.permute.xlu0 %2062 }
 0x1b3   : > { %4174 = vst [vmem:[#allocation11_spill] sm:$0xff] %v3895_v14  ;;  %v3899_v5 = vpop.f32.mrb[26].mxu0  ;;  %4187 = vst [vmem:[#allocation24_spill] sm:$0xff] %v3967_v49 }
 0x1b4   : > { %4175 = vst [vmem:[#allocation12_spill] sm:$0xff] %v3899_v5  ;;  %v3901_v6 = vpop.f32.mrb[27].mxu0 }
 0x1b5   : > { %4176 = vst [vmem:[#allocation13_spill] sm:$0xff] %v3901_v6 }
 0x1b6   : > { %v2073_v14 = vpop.permute.xlu0 %2072 }
 0x1ba   : > { %v2083_v25 = vpop.permute.xlu0 %2082 }
 0x1bd   : > { %3093 = vmatmul.mubr.msk.bf16.vlgmr.msra.gmra.mrb[44].mxu1 %vm446_vm0, %v3334_v50  ;;  %v3969_v50 = vpop.permute.xlu1 %2067 }
 0x1be   : > { %4188 = vst [vmem:[#allocation25_spill] sm:$0xff] %v3969_v50 }
 0x1c1   : > { %v2078_v62 = vpop.permute.xlu1 %2077 }
 0x22c   : > { %v3925_v46 = vpop.f32.mrb[0].mxu1 }
 0x22d   : > { %v3927_v19 = vpop.f32.mrb[1].mxu1 }
 0x22e   : > { %v3929_v21 = vpop.f32.mrb[2].mxu1 }
 0x22f   : > { %v3931_v22 = vpop.f32.mrb[3].mxu1 }
 0x234   : > { %v3933_v26 = vpop.f32.mrb[4].mxu1 }
 0x235   : > { %v3935_v27 = vpop.f32.mrb[5].mxu1 }
 0x236   : > { %v3937_v30 = vpop.f32.mrb[6].mxu1 }
 0x237   : > { %v3939_v31 = vpop.f32.mrb[7].mxu1 }
 0x23c   : > { %v3943_v36 = vpop.f32.mrb[8].mxu1 }
 0x23d   : > { %4181 = vst [vmem:[#allocation18_spill] sm:$0xff] %v3943_v36  ;;  %v3945_v37 = vpop.f32.mrb[9].mxu1 }
 0x23e   : > { %4182 = vst [vmem:[#allocation19_spill] sm:$0xff] %v3945_v37  ;;  %v3947_v38 = vpop.f32.mrb[10].mxu1 }
 0x23f   : > { %4183 = vst [vmem:[#allocation20_spill] sm:$0xff] %v3947_v38  ;;  %v3949_v39 = vpop.f32.mrb[11].mxu1  ;;  %v2088_v38 = vpop.permute.xlu1 %2087 }
 0x240   : > { %4184 = vst [vmem:[#allocation21_spill] sm:$0xff] %v3949_v39 }
 0x244   : > { %v3006_v42 = vpop.f32.mrb[12].mxu1 }
 0x245   : > { %v1423_v43 = vpop.f32.mrb[13].mxu1  ;;  %v1847_v60 = vmul.f32 %v3006_v42, %v1826_v24 }
 0x246   : > { %v3007_v45 = vpop.f32.mrb[14].mxu1  ;;  %v1845_v39 = vmul.f32 %v1816_v20, %v1423_v43 }
 0x247   : > { %v1426_v47 = vpop.f32.mrb[15].mxu1  ;;  %v1848_v50 = vmul.f32 %v3007_v45, %v1831_v28 }
 0x248   : > { %v1846_v37 = vmul.f32 %v1821_v23, %v1426_v47 }
 0x24c   : > { %v3026_v52 = vpop.f32.mrb[16].mxu1 }
 0x24d   : > { %v1674_v53 = vpop.f32.mrb[17].mxu1 }
 0x24e   : > { %v3027_v56 = vpop.f32.mrb[18].mxu1 }
 0x24f   : > { %v1677_v58 = vpop.f32.mrb[19].mxu1  ;;  %v2093_v24 = vmul.f32 %v3027_v56, %v2028_v41  ;;  %v1838_v41 = vmul.f32 %v3911_v11, %v3939_v31 }
 0x254   : > { %v3030_v63 = vpop.f32.mrb[20].mxu1 }
 0x255   : > { %v1690_v0 = vpop.f32.mrb[21].mxu1 }
 0x256   : > { %v3963_v1 = vpop.f32.mrb[22].mxu1 }
 0x257   : > { %v3965_v3 = vpop.f32.mrb[23].mxu1 }
 0x258   : > { %v2095_v47 = vmul.f32 %v3953_v48, %v3965_v3 }
 0x25c   : > { %v3971_v6 = vpop.f32.mrb[24].mxu1 }
 0x25d   : > { %4189 = vst [vmem:[#allocation26_spill] sm:$0xff] %v3971_v6  ;;  %v3973_v5 = vpop.f32.mrb[25].mxu1 }
 0x25e   : > { %4190 = vst [vmem:[#allocation27_spill] sm:$0xff] %v3973_v5  ;;  %v3975_v2 = vpop.f32.mrb[26].mxu1 }
 0x25f   : > { %4191 = vst [vmem:[#allocation28_spill] sm:$0xff] %v3975_v2  ;;  %v3977_v29 = vpop.f32.mrb[27].mxu1 }
 0x260   : > { %4192 = vst [vmem:[#allocation29_spill] sm:$0xff] %v3977_v29 }
 0x264   : > { %v3038_v61 = vpop.f32.mrb[28].mxu1 }
 0x265   : > { %v2104_v57 = vmul.f32 %v3038_v61, %v2083_v25  ;;  %v1722_v16 = vpop.f32.mrb[29].mxu1  ;;  %v1835_v61 = vmul.f32 %v3925_v46, %v3903_v7  ;;  %v1833_v25 = vmul.f32 %v3897_v4, %v3927_v19  ;;  %v2091_v4 = vmul.f32 %v3941_v34, %v1677_v58  ;;  %v4010_v34 = vld [vmem:[%s4163_s6] ss:$0 sm:$0xff] }
 0x266   : > { %v2102_v49 = vmul.f32 %v2073_v14, %v1722_v16  ;;  %v3039_v18 = vpop.f32.mrb[30].mxu1  ;;  %v2092_v16 = vmul.f32 %v3026_v52, %v2023_v40  ;;  %v1840_v40 = vmul.f32 %v3937_v30, %v3915_v13  ;;  %v2097_v13 = vmul.f32 %v3963_v1, %v3957_v55  ;;  %v4193_v1 = vld [vmem:[#allocation16_spill] sm:$0xff] }
 0x267   : > { %v3979_v15 = vadd.f32 %v2104_v57, %v1847_v60  ;;  %v2105_v6 = vmul.f32 %v3039_v18, %v2088_v38  ;;  %v1725_v5 = vpop.f32.mrb[31].mxu1  ;;  %v1836_v57 = vmul.f32 %v3929_v21, %v3907_v9  ;;  %v4000_v9 = vld [vmem:[%s4162_s5] ss:$0 sm:$0xff] }
 0x268   : > { %v3981_v36 = vadd.f32 %v2102_v49, %v1845_v39  ;;  %v2103_v2 = vmul.f32 %v2078_v62, %v1725_v5  ;;  %v1834_v5 = vmul.f32 %v3905_v8, %v3931_v22  ;;  %v1839_v22 = vmul.f32 %v3933_v26, %v3913_v12  ;;  %v4194_v49 = vld [vmem:[#allocation18_spill] sm:$0xff] }
 0x269   : > { %v3983_v29 = vadd.f32 %v2105_v6, %v1848_v50  ;;  %v2090_v6 = vmul.f32 %v2013_v33, %v1674_v53  ;;  %v1837_v33 = vmul.f32 %v3909_v10, %v3935_v27  ;;  %v2096_v26 = vmul.f32 %v3030_v63, %v3955_v51 }
 0x26a   : > { %v3985_v17 = vadd.f32 %v2103_v2, %v1846_v37  ;;  %v2094_v27 = vmul.f32 %v3951_v44, %v1690_v0  ;;  %v1843_v48 = vmul.f32 %v4194_v49, %v4193_v1 }
 0x26c   : > { %v3058_v14 = vpop.f32.mrb[32].mxu1 }
 0x26d   : > { %v1940_v18 = vadd.f32 %v3058_v14, %v1835_v61  ;;  %v1931_v20 = vpop.f32.mrb[33].mxu1  ;;  %v4195_v61 = vld [vmem:[#allocation19_spill] sm:$0xff] }
 0x26e   : > { %v1932_v2 = vadd.f32 %v1931_v20, %v1833_v25  ;;  %v3059_v23 = vpop.f32.mrb[34].mxu1  ;;  %v4196_v25 = vld [vmem:[#allocation14_spill] sm:$0xff]  ;;  %v4197_v20 = vld [vmem:[#allocation17_spill] sm:$0xff] }
 0x26f   : > { %v2108_v28 = vadd.f32 %v2092_v16, %v1940_v18  ;;  %v1943_v7 = vadd.f32 %v3059_v23, %v1836_v57  ;;  %v1934_v46 = vpop.f32.mrb[35].mxu1  ;;  %v1841_v14 = vmul.f32 %v4196_v25, %v4195_v61  ;;  %v4200_v23 = vld [vmem:[#allocation15_spill] sm:$0xff] }
 0x270   : > { %v2106_v19 = vadd.f32 %v2090_v6, %v1932_v2  ;;  %v1935_v37 = vadd.f32 %v1934_v46, %v1834_v5  ;;  %v4198_v5 = vld [vmem:[#allocation20_spill] sm:$0xff]  ;;  %v4199_v2 = vld [vmem:[#allocation21_spill] sm:$0xff]  ;;  %v4214_v25 = vld [vmem:[#allocation11_spill] sm:$0xff] }
 0x271   : > { %v2109_v21 = vadd.f32 %v2093_v24, %v1943_v7  ;;  %v2131_v8 = vadd.f32 %v4000_v9, %v2108_v28  ;;  %v1844_v6 = vmul.f32 %v4198_v5, %v4197_v20  ;;  %v1842_v24 = vmul.f32 %v4200_v23, %v4199_v2  ;;  %v4201_v28 = vld [vmem:[#allocation6_spill] sm:$0xff] }
 0x272   : > { %v2107_v38 = vadd.f32 %v2091_v4, %v1935_v37  ;;  %v2129_v39 = vadd.f32 %v4000_v9, %v2106_v19  ;;  %v4202_v4 = vld [vmem:[#allocation24_spill] sm:$0xff]  ;;  %v4203_v19 = vld [vmem:[#allocation26_spill] sm:$0xff] }
 0x273   : > { %v2356_v12 = vadd.f32 %v3877_v32, %v2131_v8  ;;  %v2132_v10 = vadd.f32 %v4000_v9, %v2109_v21  ;;  %v2100_v37 = vmul.f32 %v4203_v19, %v4202_v4  ;;  %v4204_v21 = vld [vmem:[#allocation27_spill] sm:$0xff]  ;;  %v4205_v8 = vld [vmem:[#allocation22_spill] sm:$0xff]  ;;  %v3153_v19 = vadd.f32 %v3979_v15, %v4000_v9 }
 0x274   : > { %v2354_v42 = vadd.f32 %v3879_v35, %v2129_v39  ;;  %v3062_v43 = vpop.f32.mrb[36].mxu1  ;;  %v2130_v45 = vadd.f32 %v4000_v9, %v2107_v38 }
 0x275   : > { %v2379_v11 = vadd.f32 %v4010_v34, %v2356_v12  ;;  %v1956_v30 = vadd.f32 %v3062_v43, %v1839_v22  ;;  %v2357_v31 = vadd.f32 %v3881_v54, %v2132_v10  ;;  %v1947_v32 = vpop.f32.mrb[37].mxu1  ;;  %v2098_v22 = vmul.f32 %v4205_v8, %v4204_v21  ;;  %v4208_v12 = vld [vmem:[#allocation28_spill] sm:$0xff] }
 0x276   : > { %v2377_v51 = vadd.f32 %v4010_v34, %v2354_v42  ;;  %v1948_v44 = vadd.f32 %v1947_v32, %v1837_v33  ;;  %v2355_v35 = vadd.f32 %v3883_v59, %v2130_v45  ;;  %v3063_v52 = vpop.f32.mrb[38].mxu1  ;;  %v4206_v33 = vld [vmem:[#allocation7_spill] sm:$0xff]  ;;  %v4209_v42 = vld [vmem:[#allocation8_spill] sm:$0xff]  ;;  %v3156_v21 = vadd.f32 %v3981_v36, %v4000_v9 }
 0x277   : > { %v2395_v53 = vmax.f32 %v2379_v11, 0.0  ;;  %v2112_v56 = vadd.f32 %v2096_v26, %v1956_v30  ;;  %v2380_v58 = vadd.f32 %v4010_v34, %v2357_v31  ;;  %v1959_v55 = vadd.f32 %v3063_v52, %v1840_v40  ;;  %v1950_v60 = vpop.f32.mrb[39].mxu1  ;;  %v4211_v11 = vld [vmem:[#allocation23_spill] sm:$0xff] }
 0x278   : > { %v2393_v62 = vmax.f32 %v2377_v51, 0.0  ;;  %v2110_v63 = vadd.f32 %v2094_v27, %v1948_v44  ;;  %v2378_v54 = vadd.f32 %v4010_v34, %v2355_v35  ;;  %v1951_v0 = vadd.f32 %v1950_v60, %v1838_v41  ;;  %v4207_v41 = vld [vmem:[#allocation25_spill] sm:$0xff] }
 0x279   : > { %2411 = vst [vmem:[%s4037_s22 + $0x10] sm:$0xff] %v2395_v53  ;;  %v2396_v59 = vmax.f32 %v2380_v58, 0.0  ;;  %v2113_v3 = vadd.f32 %v2097_v13, %v1959_v55  ;;  %v2135_v50 = vadd.f32 %v4000_v9, %v2112_v56  ;;  %v2101_v10 = vmul.f32 %v4208_v12, %v4207_v41  ;;  %v4210_v13 = vld [vmem:[#allocation29_spill] sm:$0xff] }
 0x27a   : > { %2409 = vst [vmem:[%s4037_s22] sm:$0xff] %v2393_v62  ;;  %v2394_v57 = vmax.f32 %v2378_v54, 0.0  ;;  %v2111_v16 = vadd.f32 %v2095_v47, %v1951_v0  ;;  %v2133_v18 = vadd.f32 %v4000_v9, %v2110_v63  ;;  %v2099_v30 = vmul.f32 %v4211_v11, %v4210_v13  ;;  %v4212_v47 = vld [vmem:[#allocation9_spill] sm:$0xff] }
 0x27b   : > { %2412 = vst [vmem:[%s4037_s22 + $0x18] sm:$0xff] %v2396_v59  ;;  %v2360_v7 = vadd.f32 %v4201_v28, %v2135_v50  ;;  %v2136_v46 = vadd.f32 %v4000_v9, %v2113_v3  ;;  %v4213_v3 = vld [vmem:[#allocation10_spill] sm:$0xff] }
 0x27c   : > { %2410 = vst [vmem:[%s4037_s22 + $0x8] sm:$0xff] %v2394_v57  ;;  %v2358_v38 = vadd.f32 %v4206_v33, %v2133_v18  ;;  %v3066_v39 = vpop.f32.mrb[40].mxu1  ;;  %v2134_v40 = vadd.f32 %v4000_v9, %v2111_v16  ;;  %v4215_v18 = vld [vmem:[#allocation12_spill] sm:$0xff]  ;;  %v3159_v33 = vadd.f32 %v3983_v29, %v4000_v9 }
 0x27d   : > { %v2383_v26 = vadd.f32 %v4010_v34, %v2360_v7  ;;  %v1972_v27 = vadd.f32 %v3066_v39, %v1843_v48  ;;  %v2361_v43 = vadd.f32 %v4209_v42, %v2136_v46  ;;  %v1963_v45 = vpop.f32.mrb[41].mxu1 }
 0x27e   : > { %v2381_v31 = vadd.f32 %v4010_v34, %v2358_v38  ;;  %v1964_v32 = vadd.f32 %v1963_v45, %v1841_v14  ;;  %v2359_v51 = vadd.f32 %v4212_v47, %v2134_v40  ;;  %v3067_v44 = vpop.f32.mrb[42].mxu1  ;;  %v3162_v40 = vadd.f32 %v3985_v17, %v4000_v9 }
 0x27f   : > { %v2399_v35 = vmax.f32 %v2383_v26, 0.0  ;;  %v2116_v52 = vadd.f32 %v2100_v37, %v1972_v27  ;;  %v2384_v53 = vadd.f32 %v4010_v34, %v2361_v43  ;;  %v1975_v56 = vadd.f32 %v3067_v44, %v1844_v6  ;;  %v1966_v58 = vpop.f32.mrb[43].mxu1  ;;  %v4216_v6 = vld [vmem:[#allocation13_spill] sm:$0xff] }
 0x280   : > { %v2397_v55 = vmax.f32 %v2381_v31, 0.0  ;;  %v2114_v60 = vadd.f32 %v2098_v22, %v1964_v32  ;;  %v2382_v62 = vadd.f32 %v4010_v34, %v2359_v51  ;;  %v1967_v63 = vadd.f32 %v1966_v58, %v1842_v24 }
 0x281   : > { %2415 = vst [vmem:[%s4037_s22 + $0x30] sm:$0xff] %v2399_v35  ;;  %v2400_v54 = vmax.f32 %v2384_v53, 0.0  ;;  %v2117_v0 = vadd.f32 %v2101_v10, %v1975_v56  ;;  %v2139_v1 = vadd.f32 %v4000_v9, %v2116_v52 }
 0x282   : > { %2413 = vst [vmem:[%s4037_s22 + $0x20] sm:$0xff] %v2397_v55  ;;  %v2398_v49 = vmax.f32 %v2382_v62, 0.0  ;;  %v2115_v48 = vadd.f32 %v2099_v30, %v1967_v63  ;;  %v2137_v59 = vadd.f32 %v4000_v9, %v2114_v60 }
 0x283   : > { %2416 = vst [vmem:[%s4037_s22 + $0x38] sm:$0xff] %v2400_v54  ;;  %v2364_v50 = vadd.f32 %v4213_v3, %v2139_v1  ;;  %v2140_v61 = vadd.f32 %v4000_v9, %v2117_v0 }
 0x284   : > { %2414 = vst [vmem:[%s4037_s22 + $0x28] sm:$0xff] %v2398_v49  ;;  %v2362_v14 = vadd.f32 %v4214_v25, %v2137_v59  ;;  %v2138_v57 = vadd.f32 %v4000_v9, %v2115_v48 }
 0x285   : > { %v2387_v16 = vadd.f32 %v4010_v34, %v2364_v50  ;;  %v2365_v20 = vadd.f32 %v4215_v18, %v2140_v61 }
 0x286   : > { %v2385_v5 = vadd.f32 %v4010_v34, %v2362_v14  ;;  %v2363_v2 = vadd.f32 %v4216_v6, %v2138_v57 }
 0x287   : > { %v2403_v23 = vmax.f32 %v2387_v16, 0.0  ;;  %v2388_v24 = vadd.f32 %v4010_v34, %v2365_v20 }
 0x288   : > { %v2401_v28 = vmax.f32 %v2385_v5, 0.0  ;;  %v2386_v7 = vadd.f32 %v4010_v34, %v2363_v2 }
 0x289   : > { %2419 = vst [vmem:[%s4037_s22 + $0x50] sm:$0xff] %v2403_v23  ;;  %v2404_v46 = vmax.f32 %v2388_v24, 0.0 }
 0x28a   : > { %2417 = vst [vmem:[%s4037_s22 + $0x40] sm:$0xff] %v2401_v28  ;;  %v2402_v4 = vmax.f32 %v2386_v7, 0.0 }
 0x28b   : > { %2420 = vst [vmem:[%s4037_s22 + $0x58] sm:$0xff] %v2404_v46 }
 0x28c   : > { %2418 = vst [vmem:[%s4037_s22 + $0x48] sm:$0xff] %v2402_v4 }
 0x290   : > { %v3094_v37 = vpop.f32.mrb[44].mxu1 }
 0x291   : > { %v3154_v8 = vadd.f32 %v3153_v19, %v3094_v37  ;;  %v2339_v22 = vpop.f32.mrb[45].mxu1 }
 0x292   : > { %v3157_v38 = vadd.f32 %v3156_v21, %v2339_v22  ;;  %v3095_v39 = vpop.f32.mrb[46].mxu1 }
 0x293   : > { %v2391_v41 = vadd.f32 %v3154_v8, %v4010_v34  ;;  %v3160_v12 = vadd.f32 %v3159_v33, %v3095_v39  ;;  %v2342_v15 = vpop.f32.mrb[47].mxu1 }
 0x294   : > { %v2389_v36 = vadd.f32 %v3157_v38, %v4010_v34  ;;  %v3163_v10 = vadd.f32 %v3162_v40, %v2342_v15 }
 0x295   : > { %v2407_v29 = vmax.f32 %v2391_v41, 0.0  ;;  %v2392_v26 = vadd.f32 %v3160_v12, %v4010_v34 }
 0x296   : > { %v2405_v27 = vmax.f32 %v2389_v36, 0.0  ;;  %v2390_v17 = vadd.f32 %v3163_v10, %v4010_v34 }
 0x297   : > { %2423 = vst [vmem:[%s4037_s22 + $0x70] sm:$0xff] %v2407_v29  ;;  %v2408_v9 = vmax.f32 %v2392_v26, 0.0 }
 0x298   : > { %2421 = vst [vmem:[%s4037_s22 + $0x60] sm:$0xff] %v2405_v27  ;;  %v2406_v42 = vmax.f32 %v2390_v17, 0.0 }
 0x299   : > { %2424 = vst [vmem:[%s4037_s22 + $0x78] sm:$0xff] %v2408_v9 }
 0x29a   : > { %2422 = vst [vmem:[%s4037_s22 + $0x68] sm:$0xff] %v2406_v42 }
 0x29b   : > { %3348 = shalt.err (!%p3345_p3)
}
 0x29c   : > { %s3349_s16 = scalar_lea.hbm %s4107_s27, 2048  ;;  %s3353_s23 = scalar_lea.hbm %s4166_s9, 4096 }
 0x29d   : > { %p3350_p4 = scmp.ne.s32.totalorder %s4107_s27, %s3349_s16  ;;  %p3354_p9 = scmp.lt.u32.totalorder %s4107_s27, %s4166_s9 }
 0x29e   : > { %p3355_p10 = scmp.lt.u32.totalorder %s3353_s23, %s3349_s16  ;;  %p3357_p12 = scmp.lt.u32.totalorder %s3349_s16, %s4107_s27 }
 0x29f   : > { %p3351_p7 = pnand %p3350_p4, %p3491_p5 }
 0x2a0   : > { %p3356_p11 = por %p3355_p10, %p3354_p9 }
 0x2a1   : > { %p3352_p8 = pneg %p3351_p7 }
 0x2a2   : > { %p3358_p13 = por %p3357_p12, %p3356_p11 }
 0x2a4   : > { %p3359_p0 = pnand %p3358_p13, %p3352_p8 }
 0x2a6   : > { %3362 = shalt.err (!%p3359_p0)
}
 0x2a7   : > { %s3401_s28 = smov 128   ;;  %s3402_s29 = smov 8  }
 0x2a8   : > { %3201 = dma.vmem_to_hbm [thread:$0]  (%p3491_p5), %s4109_s24, 2048, %s4107_s27, %s4116_s13, %s3401_s28, %s3401_s28, %s3402_s29  }
 0x2a9 PF: > { %p3207_p1 = scmp.ge.s32.totalorder %s3397_s12, 2  ;;  %s2454_s14 = sand.u32 1, %s3385_s30  }
 0x2aa   : > { %s2455_s17 = scalar_lea.sflag [#allocation4], %s2454_s14 }
 0x2ab   : > { %p3204_p2 = pnand %p3207_p1, %p3495_p6 }
 0x2ad   : > { %3380 = dma.done.wait (!%p3204_p2), %s2455_s17, 2048  }
 0x2ae   : > { %3382 = vsyncadd (!%p3204_p2), %s2455_s17, 4294965248  ;;  %p19_p3 = scmp.ge.s32.totalorder %s3478_s15, 4   ;;  %s4217_s30 = smov %s3389_s10 }
 0x2af   : > { %s4218_s10 = smov %s3393_s11  ;;  %s4219_s11 = smov %s3489_s18 }
 0x2b0   : > { %s4220_s12 = smov %s3478_s15  ;;  %21 = sbr.rel (!%p19_p3) target bundleno = 3 (0x3), region = 97 }
 0x2b7   :  { %2460 = vsyncpa [#allocation4], 1 }
 0x2b8   :  { %2462 = vsyncpa [#allocation4 + $0x1], 1 }

</bundles_post_ra>
